<compile_context>
chip_gen: v7x
topology: tpu7x:2x2x1
jax: 0.10.0
libtpu: 0.0.40
codegen_flags: <defaults>
</compile_context>

<pallas_src>
import functools

import jax
import jax.numpy as jnp
from jax import lax
from jax.experimental import pallas as pl
from jax.experimental.pallas import tpu as pltpu


def _vmem():
    return pl.BlockSpec(memory_space=pltpu.MemorySpace.VMEM)


# ------------------------- fused Pallas kernel -------------------------

def daln_fused_kernel(x_ref, wf_ref, bf_ref, wb_ref, bb_ref, wc_ref, bc_ref,
                      onehot_ref, probs_ref, loss_ref, *,
                      n_src, num_classes, toalign):
    """Whole DALN forward (minus SVD) on the concatenated [source; target] batch.

    x_ref:      (2N, C*H*W)  flattened NCHW inputs, source rows first
    wf_ref:     (C*H*W, F)   stand-in feature Linear with GAP folded in
    wb_ref:     (F, B)       bottleneck Linear
    wc_ref:     (B, Kp)      classifier Linear, class dim zero-padded to Kp=128k
    onehot_ref: (2N, Kp)     one-hot source labels (target rows all zero)
    probs_ref:  (2N, Kp)     NWD softmax probabilities (padded cols ~0)
    loss_ref:   (1, 1)       mean source cross-entropy loss
    """
    x = x_ref[...]
    onehot = onehot_ref[...]
    wc = wc_ref[...]
    bc = bc_ref[...]

    # --- stand-in feature extractor: GAP (folded into wf) + Linear + ReLU ---
    f = jnp.dot(x, wf_ref[...], preferred_element_type=jnp.float32) + bf_ref[...]
    f = jnp.maximum(f, 0.0)

    # --- bottleneck: Linear + ReLU (Dropout(0.5) == identity in eval) ---
    h = jnp.dot(f, wb_ref[...], preferred_element_type=jnp.float32) + bb_ref[...]
    h = jnp.maximum(h, 0.0)

    # --- classifier logits (lane-padded); mask padded classes ---
    y = jnp.dot(h, wc, preferred_element_type=jnp.float32) + bc
    col = lax.broadcasted_iota(jnp.int32, y.shape, 1)
    neg_big = jnp.float32(-1e30)
    y = jnp.where(col < num_classes, y, neg_big)

    row = lax.broadcasted_iota(jnp.int32, (y.shape[0], 1), 0)
    src_row = (row < n_src).astype(jnp.float32)                      # (2N, 1)

    # --- classification loss: mean softmax cross-entropy over source rows ---
    m = jnp.max(y, axis=1, keepdims=True)
    lse = m + jnp.log(jnp.sum(jnp.exp(y - m), axis=1, keepdims=True))
    nll = lse - jnp.sum(y * onehot, axis=1, keepdims=True)           # valid on src rows
    loss_ref[...] = jnp.sum(nll * src_row, keepdims=True) / n_src

    # --- NWD logits (GRL == identity in the forward pass) ---
    if toalign:
        # w_gathered = classifier.weight[labels]  ==  onehot @ wc^T  (MXU)
        w_g = lax.dot_general(onehot, wc, (((1,), (1,)), ((), ())),
                              preferred_element_type=jnp.float32)    # (2N, B); tgt rows 0
        eng_org = jnp.sum(h * h, axis=1, keepdims=True)
        hw = h * w_g
        eng_aft = jnp.sum(hw * hw, axis=1, keepdims=True)
        # eps guards 0/0 (zero feature/weight overlap); target rows are discarded below.
        scalar = jnp.sqrt(eng_org / (eng_aft + jnp.float32(1e-12)))
        h_al = h * (w_g * scalar)

        y_al = jnp.dot(h_al, wc, preferred_element_type=jnp.float32) + bc
        y_al = jnp.where(col < num_classes, y_al, neg_big)
        # source rows: classifier(toaligned f_s); target rows: reuse y_t
        y_nwd = jnp.where(row < n_src, y_al, y)
    else:
        y_nwd = y

    m2 = jnp.max(y_nwd, axis=1, keepdims=True)
    e2 = jnp.exp(y_nwd - m2)
    probs_ref[...] = e2 / jnp.sum(e2, axis=1, keepdims=True)


# ------------------------- params & glue -------------------------

def init_params(key, in_channels, feat_dim, bottleneck_width, num_classes):
    k = jax.random.split(key, 6)
    return {
        # stand-in feature extractor
        "wf": 0.1 * jax.random.normal(k[0], (in_channels, feat_dim), jnp.float32),
        "bf": 0.1 * jax.random.normal(k[1], (1, feat_dim), jnp.float32),
        # bottleneck Linear
        "wb": 0.1 * jax.random.normal(k[2], (feat_dim, bottleneck_width), jnp.float32),
        "bb": 0.1 * jax.random.normal(k[3], (1, bottleneck_width), jnp.float32),
        # classifier Linear, stored PyTorch-style as (num_classes, bottleneck)
        "wc_pt": 0.1 * jax.random.normal(k[4], (num_classes, bottleneck_width), jnp.float32),
        "bc": 0.1 * jax.random.normal(k[5], (1, num_classes), jnp.float32),
    }


def prepare_params(params, H, W):
    """One-time layout prep: fold GAP into wf, transpose + lane-pad classifier."""
    HW = H * W
    num_classes = params["wc_pt"].shape[0]
    k_pad = ((num_classes + 127) // 128) * 128
    wc = jnp.transpose(params["wc_pt"])                              # (B, K), once
    prep = {
        # GAP over H*W then Linear == x_flat @ repeat(wf / HW, HW)  (exact)
        "wf_eff": jnp.repeat(params["wf"] / HW, HW, axis=0),         # (C*HW, F)
        "bf": params["bf"],
        "wb": params["wb"],
        "bb": params["bb"],
        "wc_pad": jnp.pad(wc, ((0, 0), (0, k_pad - num_classes))),   # (B, Kp)
        "bc_pad": jnp.pad(params["bc"], ((0, 0), (0, k_pad - num_classes))),
    }
    return prep, num_classes


@functools.partial(jax.jit, static_argnames=("num_classes", "toalign"))
def daln_forward(prep, x_s, labels_s, x_t, num_classes,
                 trade_off_lambda=1.0, toalign=True):
    n_s = x_s.shape[0]
    n_t = x_t.shape[0]
    k_pad = prep["wc_pad"].shape[1]

    # single batched pass over [source; target]
    x = jnp.concatenate([x_s, x_t], axis=0).reshape(n_s + n_t, -1).astype(jnp.float32)
    onehot = jnp.concatenate(
        [jax.nn.one_hot(labels_s, k_pad, dtype=jnp.float32),
         jnp.zeros((n_t, k_pad), jnp.float32)], axis=0)

    probs_pad, loss = pl.pallas_call(
        functools.partial(daln_fused_kernel, n_src=n_s,
                          num_classes=num_classes, toalign=toalign),
        out_shape=(jax.ShapeDtypeStruct((n_s + n_t, k_pad), jnp.float32),
                   jax.ShapeDtypeStruct((1, 1), jnp.float32)),
        in_specs=[_vmem()] * 8,
        out_specs=(_vmem(), _vmem()),
    )(x, prep["wf_eff"], prep["bf"], prep["wb"], prep["bb"],
      prep["wc_pad"], prep["bc_pad"], onehot)

    cls_loss = loss[0, 0]

    # ---- Nuclear Wasserstein Discrepancy ----
    probs = probs_pad[:, :num_classes]
    p_s, p_t = probs[:n_s], probs[n_s:]
    # TODO(synk): nuclear norm (SVD) has no Pallas equivalent; uses XLA SVD.
    nuc_s = jnp.sum(jnp.linalg.svd(p_s, compute_uv=False))
    nuc_t = jnp.sum(jnp.linalg.svd(p_t, compute_uv=False))
    nwd = (-nuc_t + nuc_s) / p_t.shape[0]

    discrepancy_loss = -nwd
    transfer_loss = discrepancy_loss * trade_off_lambda
    return cls_loss + transfer_loss


if __name__ == "__main__":
    # small shapes: batch=4 per domain, channels=4, spatial=16x16,
    # stand-in feature dim=32, bottleneck=32, num_classes=8
    N, C, H, W = 4, 4, 16, 16
    FEAT, BOTTLENECK, NUM_CLASSES = 32, 32, 8

    key = jax.random.PRNGKey(0)
    k_param, k_xs, k_xt, k_lab = jax.random.split(key, 4)

    params = init_params(k_param, C, FEAT, BOTTLENECK, NUM_CLASSES)
    prep, num_classes = prepare_params(params, H, W)

    x_s = jax.random.normal(k_xs, (N, C, H, W), jnp.float32)
    x_t = jax.random.normal(k_xt, (N, C, H, W), jnp.float32)
    labels_s = jax.random.randint(k_lab, (N,), 0, NUM_CLASSES, dtype=jnp.int32)

    loss = daln_forward(prep, x_s, labels_s, x_t, num_classes=num_classes,
                        trade_off_lambda=1.0, toalign=True)
    loss = jax.block_until_ready(loss)
    assert jnp.isfinite(loss)
    print("KERNEL_OK")
</pallas_src>

<mosaic_0001>
module attributes {stable_mosaic.version = 11 : i64} {
  func.func @daln_fused_kernel(%arg0: memref<8x1024xf32, #tpu.memory_space<vmem>>, %arg1: memref<1024x32xf32, #tpu.memory_space<vmem>>, %arg2: memref<1x32xf32, #tpu.memory_space<vmem>>, %arg3: memref<32x32xf32, #tpu.memory_space<vmem>>, %arg4: memref<1x32xf32, #tpu.memory_space<vmem>>, %arg5: memref<32x128xf32, #tpu.memory_space<vmem>>, %arg6: memref<1x128xf32, #tpu.memory_space<vmem>>, %arg7: memref<8x128xf32, #tpu.memory_space<vmem>>, %arg8: memref<8x128xf32, #tpu.memory_space<vmem>>, %arg9: memref<1x1xf32, #tpu.memory_space<vmem>>) attributes {dimension_semantics = [], scalar_prefetch = 0 : i64, scratch_operands = 0 : i64, tpu.core_type = #tpu.core_type<tc>} {
    %c0 = arith.constant 0 : index
    %c0_0 = arith.constant 0 : index
    %0 = vector.load %arg0[%c0, %c0_0] : memref<8x1024xf32, #tpu.memory_space<vmem>>, vector<8x1024xf32>
    %c0_1 = arith.constant 0 : index
    %c0_2 = arith.constant 0 : index
    %1 = vector.load %arg7[%c0_1, %c0_2] : memref<8x128xf32, #tpu.memory_space<vmem>>, vector<8x128xf32>
    %c0_3 = arith.constant 0 : index
    %c0_4 = arith.constant 0 : index
    %2 = vector.load %arg5[%c0_3, %c0_4] : memref<32x128xf32, #tpu.memory_space<vmem>>, vector<32x128xf32>
    %c0_5 = arith.constant 0 : index
    %c0_6 = arith.constant 0 : index
    %3 = vector.load %arg6[%c0_5, %c0_6] : memref<1x128xf32, #tpu.memory_space<vmem>>, vector<1x128xf32>
    %c0_7 = arith.constant 0 : index
    %c0_8 = arith.constant 0 : index
    %4 = vector.load %arg1[%c0_7, %c0_8] : memref<1024x32xf32, #tpu.memory_space<vmem>>, vector<1024x32xf32>
    %cst = arith.constant dense<0.000000e+00> : vector<8x32xf32>
    %5 = tpu.matmul %0, %4, %cst {dimension_numbers = #tpu.dot_dimension_numbers<[1], [0], [0], [1], [0, 0, 1, 1], [], []>} : vector<8x1024xf32>, vector<1024x32xf32>, vector<8x32xf32> -> vector<8x32xf32>
    %c0_9 = arith.constant 0 : index
    %c0_10 = arith.constant 0 : index
    %6 = vector.load %arg2[%c0_9, %c0_10] : memref<1x32xf32, #tpu.memory_space<vmem>>, vector<1x32xf32>
    %7 = vector.broadcast %6 : vector<1x32xf32> to vector<8x32xf32>
    %8 = arith.addf %5, %7 : vector<8x32xf32>
    %cst_11 = arith.constant 0.000000e+00 : f32
    %9 = vector.broadcast %cst_11 : f32 to vector<8x32xf32>
    %10 = arith.maximumf %8, %9 : vector<8x32xf32>
    %c0_12 = arith.constant 0 : index
    %c0_13 = arith.constant 0 : index
    %11 = vector.load %arg3[%c0_12, %c0_13] : memref<32x32xf32, #tpu.memory_space<vmem>>, vector<32x32xf32>
    %cst_14 = arith.constant dense<0.000000e+00> : vector<8x32xf32>
    %12 = tpu.matmul %10, %11, %cst_14 {dimension_numbers = #tpu.dot_dimension_numbers<[1], [0], [0], [1], [0, 0, 1, 1], [], []>} : vector<8x32xf32>, vector<32x32xf32>, vector<8x32xf32> -> vector<8x32xf32>
    %c0_15 = arith.constant 0 : index
    %c0_16 = arith.constant 0 : index
    %13 = vector.load %arg4[%c0_15, %c0_16] : memref<1x32xf32, #tpu.memory_space<vmem>>, vector<1x32xf32>
    %14 = vector.broadcast %13 : vector<1x32xf32> to vector<8x32xf32>
    %15 = arith.addf %12, %14 : vector<8x32xf32>
    %cst_17 = arith.constant 0.000000e+00 : f32
    %16 = vector.broadcast %cst_17 : f32 to vector<8x32xf32>
    %17 = arith.maximumf %15, %16 : vector<8x32xf32>
    %cst_18 = arith.constant dense<0.000000e+00> : vector<8x128xf32>
    %18 = tpu.matmul %17, %2, %cst_18 {dimension_numbers = #tpu.dot_dimension_numbers<[1], [0], [0], [1], [0, 0, 1, 1], [], []>} : vector<8x32xf32>, vector<32x128xf32>, vector<8x128xf32> -> vector<8x128xf32>
    %19 = vector.broadcast %3 : vector<1x128xf32> to vector<8x128xf32>
    %20 = arith.addf %18, %19 : vector<8x128xf32>
    %21 = tpu.iota {dimensions = array<i32: 1>} : vector<8x128xi32>
    %c8_i32 = arith.constant 8 : i32
    %22 = vector.broadcast %c8_i32 : i32 to vector<8x128xi32>
    %23 = arith.cmpi slt, %21, %22 : vector<8x128xi32>
    %cst_19 = arith.constant -1.000000e+30 : f32
    %24 = vector.broadcast %cst_19 : f32 to vector<8x128xf32>
    %25 = arith.select %23, %20, %24 : vector<8x128xi1>, vector<8x128xf32>
    %26 = tpu.iota {dimensions = array<i32: 0>} : vector<8x1xi32>
    %c4_i32 = arith.constant 4 : i32
    %27 = vector.broadcast %c4_i32 : i32 to vector<8x1xi32>
    %28 = arith.cmpi slt, %26, %27 : vector<8x1xi32>
    %29 = arith.extui %28 : vector<8x1xi1> to vector<8x1xi32>
    %30 = arith.sitofp %29 : vector<8x1xi32> to vector<8x1xf32>
    %cst_20 = arith.constant dense<0xFF800000> : vector<8xf32>
    %31 = vector.multi_reduction <maximumf>, %25, %cst_20 [1] : vector<8x128xf32> to vector<8xf32>
    %32 = vector.shape_cast %31 : vector<8xf32> to vector<8x1xf32>
    %33 = vector.broadcast %32 : vector<8x1xf32> to vector<8x128xf32>
    %34 = arith.subf %25, %33 : vector<8x128xf32>
    %35 = math.exp %34 : vector<8x128xf32>
    %cst_21 = arith.constant dense<0.000000e+00> : vector<8xf32>
    %36 = vector.multi_reduction <add>, %35, %cst_21 [1] : vector<8x128xf32> to vector<8xf32>
    %37 = vector.shape_cast %36 : vector<8xf32> to vector<8x1xf32>
    %38 = math.log %37 : vector<8x1xf32>
    %39 = arith.addf %32, %38 : vector<8x1xf32>
    %40 = arith.mulf %25, %1 : vector<8x128xf32>
    %cst_22 = arith.constant dense<0.000000e+00> : vector<8xf32>
    %41 = vector.multi_reduction <add>, %40, %cst_22 [1] : vector<8x128xf32> to vector<8xf32>
    %42 = vector.shape_cast %41 : vector<8xf32> to vector<8x1xf32>
    %43 = arith.subf %39, %42 : vector<8x1xf32>
    %44 = arith.mulf %43, %30 : vector<8x1xf32>
    %45 = vector.shape_cast %44 : vector<8x1xf32> to vector<1x8x1xf32>
    %cst_23 = arith.constant dense<0.000000e+00> : vector<1xf32>
    %46 = vector.multi_reduction <add>, %45, %cst_23 [1, 2] : vector<1x8x1xf32> to vector<1xf32>
    %47 = vector.shape_cast %46 : vector<1xf32> to vector<1x1x1xf32>
    %48 = vector.extract %47[0, 0, 0] : f32 from vector<1x1x1xf32>
    %49 = vector.broadcast %48 : f32 to vector<1x1xf32>
    %cst_24 = arith.constant 4.000000e+00 : f32
    %50 = vector.broadcast %cst_24 : f32 to vector<1x1xf32>
    %51 = arith.divf %49, %50 : vector<1x1xf32>
    %c0_25 = arith.constant 0 : index
    %c0_26 = arith.constant 0 : index
    %52 = vector.load %arg9[%c0_25, %c0_26] : memref<1x1xf32, #tpu.memory_space<vmem>>, vector<1x1xf32>
    tpu.vector_store %arg9[%c0_25, %c0_26], %51 {strides = array<i32>} : memref<1x1xf32, #tpu.memory_space<vmem>>, vector<1x1xf32>,
    %cst_27 = arith.constant dense<0.000000e+00> : vector<8x32xf32>
    %53 = tpu.matmul %1, %2, %cst_27 {dimension_numbers = #tpu.dot_dimension_numbers<[1], [1], [0], [0], [0, 0, 1, 0], [], []>} : vector<8x128xf32>, vector<32x128xf32>, vector<8x32xf32> -> vector<8x32xf32>
    %54 = arith.mulf %17, %17 : vector<8x32xf32>
    %cst_28 = arith.constant dense<0.000000e+00> : vector<8xf32>
    %55 = vector.multi_reduction <add>, %54, %cst_28 [1] : vector<8x32xf32> to vector<8xf32>
    %56 = vector.shape_cast %55 : vector<8xf32> to vector<8x1xf32>
    %57 = arith.mulf %17, %53 : vector<8x32xf32>
    %58 = arith.mulf %57, %57 : vector<8x32xf32>
    %cst_29 = arith.constant dense<0.000000e+00> : vector<8xf32>
    %59 = vector.multi_reduction <add>, %58, %cst_29 [1] : vector<8x32xf32> to vector<8xf32>
    %60 = vector.shape_cast %59 : vector<8xf32> to vector<8x1xf32>
    %cst_30 = arith.constant 9.99999996E-13 : f32
    %61 = vector.broadcast %cst_30 : f32 to vector<8x1xf32>
    %62 = arith.addf %60, %61 : vector<8x1xf32>
    %63 = arith.divf %56, %62 : vector<8x1xf32>
    %64 = math.sqrt %63 : vector<8x1xf32>
    %65 = vector.broadcast %64 : vector<8x1xf32> to vector<8x32xf32>
    %66 = arith.mulf %53, %65 : vector<8x32xf32>
    %67 = arith.mulf %17, %66 : vector<8x32xf32>
    %cst_31 = arith.constant dense<0.000000e+00> : vector<8x128xf32>
    %68 = tpu.matmul %67, %2, %cst_31 {dimension_numbers = #tpu.dot_dimension_numbers<[1], [0], [0], [1], [0, 0, 1, 1], [], []>} : vector<8x32xf32>, vector<32x128xf32>, vector<8x128xf32> -> vector<8x128xf32>
    %69 = vector.broadcast %3 : vector<1x128xf32> to vector<8x128xf32>
    %70 = arith.addf %68, %69 : vector<8x128xf32>
    %c8_i32_32 = arith.constant 8 : i32
    %71 = vector.broadcast %c8_i32_32 : i32 to vector<8x128xi32>
    %72 = arith.cmpi slt, %21, %71 : vector<8x128xi32>
    %cst_33 = arith.constant -1.000000e+30 : f32
    %73 = vector.broadcast %cst_33 : f32 to vector<8x128xf32>
    %74 = arith.select %72, %70, %73 : vector<8x128xi1>, vector<8x128xf32>
    %c4_i32_34 = arith.constant 4 : i32
    %75 = vector.broadcast %c4_i32_34 : i32 to vector<8x1xi32>
    %76 = arith.cmpi slt, %26, %75 : vector<8x1xi32>
    %77 = vector.shape_cast %76 : vector<8x1xi1> to vector<8x1xi1>
    %78 = vector.broadcast %77 : vector<8x1xi1> to vector<8x128xi1>
    %79 = arith.select %78, %74, %25 : vector<8x128xi1>, vector<8x128xf32>
    %cst_35 = arith.constant dense<0xFF800000> : vector<8xf32>
    %80 = vector.multi_reduction <maximumf>, %79, %cst_35 [1] : vector<8x128xf32> to vector<8xf32>
    %81 = vector.shape_cast %80 : vector<8xf32> to vector<8x1xf32>
    %82 = vector.broadcast %81 : vector<8x1xf32> to vector<8x128xf32>
    %83 = arith.subf %79, %82 : vector<8x128xf32>
    %84 = math.exp %83 : vector<8x128xf32>
    %cst_36 = arith.constant dense<0.000000e+00> : vector<8xf32>
    %85 = vector.multi_reduction <add>, %84, %cst_36 [1] : vector<8x128xf32> to vector<8xf32>
    %86 = vector.shape_cast %85 : vector<8xf32> to vector<8x1xf32>
    %87 = vector.broadcast %86 : vector<8x1xf32> to vector<8x128xf32>
    %88 = arith.divf %84, %87 : vector<8x128xf32>
    %c0_37 = arith.constant 0 : index
    %c0_38 = arith.constant 0 : index
    %89 = vector.load %arg8[%c0_37, %c0_38] : memref<8x128xf32, #tpu.memory_space<vmem>>, vector<8x128xf32>
    tpu.vector_store %arg8[%c0_37, %c0_38], %88 {strides = array<i32>} : memref<8x128xf32, #tpu.memory_space<vmem>>, vector<8x128xf32>,
    return
  }
}

</mosaic_0001>

<bundles_post_ra>
// kernel: custom-call.50
= control target key start
LH: loop header
LB: loop body
LE: loop exit
PB: predicated region body
PF: predicated region fallthrough
CT: control target
= control target key end

     0   :  { %4 = vsyncpa [#allocation4], 0  ;;  %v322_v1 = vmov 0.0   ;;  %s343_s11 = smov 0   ;;  %s405_s0 = inlined_call_operand.vmem [shape: f32[8,4], index: 0, kind: input, shape index: {}]   ;;  %s406_s1 = inlined_call_operand.vmem [shape: f32[8,4], index: 1, kind: output, shape index: {0}]   ;;  %s407_s2 = inlined_call_operand.hbm [shape: f32[4], index: 2, kind: output, shape index: {1}]  }
   0x1   :  { %v32_v0 = vld [vmem:[%s405_s0] sm:$0xff]  ;;  %39 = vst [vmem:[#allocation2] sm:$0x1] %v322_v1 }
   0x2   :  { %38 = vst [vmem:[#allocation1] sm:$0xff] %v32_v0 }
   0x3 LB: > { %v47_v2 = vlaneseq  ;;  %v351_v5 = vstv %s320_s11  ;;  %s74_s0 = scalar_lea.vmem [#allocation1], %s320_s11  ;;  %s110_s12 = smov [#allocation1]  ;;  %v323_v58 = vmov 1.0   ;;  %s320_s11 = sphi %s343_s11, %s45_s11  }
   0x4   : > { %s132_s13 = scalar_lea.vmem [#allocation5], %s320_s11  ;;  %s148_s14 = smov [#allocation1] }
   0x5   : > { %v348_v4 = vshrl.u32 %v47_v2, 7  ;;  %v126_v47 = vand.u32 127, %v47_v2  ;;  %s149_s15 = smov [#allocation5] }
   0x7   : > { %vm51_vm0 = vcmp.gt.s32.totalorder %v348_v4, %v351_v5  ;;  %v113_v4 = vmov %v348_v4  ;;  %vm364_vm10 = vcmp.eq.s32.totalorder %v126_v47, %v351_v5  ;;  %vm178_vm13 = vcmp.gt.s32.totalorder %v126_v47, %v351_v5 }
   0x8   : > { %vm117_vm7 = vcmp.gt.s32.totalorder %v113_v4, %v351_v5  ;;  %vm118_vm8 = vcmp.lt.s32.totalorder %v113_v4, 8  ;;  %v145_v59 = vld [vmem:[#allocation2] ss:$0 sm:$0xff]  ;;  %v152_v4 = vmov %v348_v4 }
   0x9   : > { %v46_v3 = vld [vmem:[#allocation1] sm:$0xff]  ;;  %vm119_vm9 = vmand %vm117_vm7, %vm118_vm8  ;;  %vm157_vm11 = vcmp.lt.s32.totalorder %v152_v4, 8  ;;  %v169_v4 = vmov %v348_v4 }
   0xa   : > { %v54_v6 = vsel %vm51_vm0, %v46_v3, 0.0  ;;  %v75_v14 = vld [vmem:[%s74_s0] ss:$0 sm:$0xff]  ;;  %vm186_vm12 = vcmp.ge.s32.totalorder %v169_v4, %v351_v5 }
   0xb   : > { %v55_v7 = vmul.f32 %v54_v6, %v54_v6  ;;  %v76_v15 = vand.u32 2147483647, %v75_v14  ;;  %vm101_vm6 = vcmp.lt.f32.partialorder %v75_v14, 0.0  ;;  %v114_v44 = vld [vmem:[%s110_s12] sm:$0xff]  ;;  %vm187_vm14 = vmand %vm364_vm10, %vm186_vm12 }
   0xc   : > { %v120_v48 = vsel %vm119_vm9, %v114_v44, 0.0  ;;  %v155_v62 = vld [vmem:[%s148_s14] sm:$0xff]  ;;  %s165_s14 = smov %s148_s14 }
   0xd   : > { %v56_v8 = vrot.slane %v55_v7, 4  ;;  %v77_v20 = vmax.f32 %v76_v15, 0.0  ;;  %s190_s16 = scalar_lea.vmem %s165_s14, %s320_s11  ;;  %s45_s11 = sadd.s32 1, %s320_s11  }
   0xe   : > { %p42_p0 = scmp.ge.s32.totalorder %s45_s11, 4  }
   0xf   : > { %v57_v9 = vadd.f32 %v56_v8, %v55_v7  ;;  %s324_s19 = smov (%p42_p0), [#allocation3]  }
  0x10   :  { %s242_s20 = sshll.u32 (%p42_p0), %s324_s19, 4  ;;  %s243_s20 = int_to_ptr.vmem [resolvable:$true] %s242_s20 }
  0x11   : > { %v58_v10 = vrot.slane %v57_v9, 2  ;;  %s290_s21 = scalar_lea.vmem (%p42_p0), %s243_s20, 16  ;;  %s294_s22 = scalar_lea.vmem (%p42_p0), %s243_s20, 32 }
  0x12   :  { %p291_p1 = scmp.ne.s32.totalorder (%p42_p0), %s243_s20, %s290_s21  ;;  %p295_p2 = scmp.lt.s32.totalorder (%p42_p0), %s243_s20, %s243_s20 }
  0x13   : > { %v59_v11 = vadd.f32 %v58_v10, %v57_v9  ;;  %p296_p3 = scmp.lt.s32.totalorder (%p42_p0), %s294_s22, %s290_s21 }
  0x15   : > { %v60_v12 = vrot.slane %v59_v11, 1  ;;  %p297_p4 = por (%p42_p0), %p296_p3, %p295_p2 }
  0x17   : > { %v61_v13 = vadd.f32 %v60_v12, %v59_v11  ;;  %v176_v12 = vld [vmem:[%s165_s14] sm:$0xff]  ;;  %p298_p5 = pnand (%p42_p0), %p297_p4, %p291_p1 }
  0x19   : > { %280 = vrsqrt.f32 %v61_v13  ;;  %vm64_vm1 = vcmp.eq.f32.partialorder %v61_v13, inf  ;;  %v67_v17 = vand.u32 2147483648, %v61_v13  ;;  %vm66_vm2 = vcmp.eq.f32.partialorder %v61_v13, 0.0 }
  0x23   : > { %v281_v16 = vpop.eup %280 }
  0x24   : > { %v63_v18 = vmul.f32 %v281_v16, %v61_v13 }
  0x26   : > { %v65_v19 = vsel %vm64_vm1, %v61_v13, %v63_v18 }
  0x27   : > { %v68_v21 = vsel %vm66_vm2, %v67_v17, %v65_v19 }
  0x28   : > { %v78_v22 = vand.u32 2147483647, %v68_v21 }
  0x2a   : > { %v79_v23 = vmax.f32 %v77_v20, %v78_v22 }
  0x2c   : > { %282 = vrcp.f32 %v79_v23  ;;  %vm91_vm5 = vcmp.eq.f32.partialorder %v79_v23, 0.0 }
  0x36   : > { %v283_v24 = vpop.eup %282 }
  0x37   : > { %v81_v25 = vmul.f32 %v283_v24, %v76_v15  ;;  %v84_v26 = vmul.f32 0.0, %v283_v24  ;;  %v88_v27 = vmul.f32 %v283_v24, %v78_v22 }
  0x39   : > { %v82_v28 = vmul.f32 %v81_v25, %v81_v25  ;;  %v85_v29 = vmul.f32 %v84_v26, %v84_v26  ;;  %v89_v30 = vmul.f32 %v88_v27, %v88_v27 }
  0x3b   : > { %v86_v31 = vadd.f32 %v85_v29, %v82_v28 }
  0x3d   : > { %v90_v32 = vadd.f32 %v89_v30, %v86_v31 }
  0x3f   : > { %284 = vrsqrt.f32 %v90_v32  ;;  %vm94_vm3 = vcmp.eq.f32.partialorder %v90_v32, inf  ;;  %v97_v34 = vand.u32 2147483648, %v90_v32  ;;  %vm96_vm4 = vcmp.eq.f32.partialorder %v90_v32, 0.0 }
  0x49   : > { %v285_v33 = vpop.eup %284 }
  0x4a   : > { %v93_v35 = vmul.f32 %v285_v33, %v90_v32 }
  0x4c   : > { %v95_v36 = vsel %vm94_vm3, %v90_v32, %v93_v35 }
  0x4d   : > { %v98_v37 = vsel %vm96_vm4, %v97_v34, %v95_v36 }
  0x4e   : > { %v99_v38 = vmul.f32 %v98_v37, %v79_v23 }
  0x50   : > { %v100_v39 = vsel %vm91_vm5, 0.0, %v99_v38 }
  0x51   : > { %v102_v40 = vxor.u32 2147483648, %v100_v39 }
  0x53   : > { %v103_v41 = vsel %vm101_vm6, %v100_v39, %v102_v40 }
  0x54   : > { %v358_v42 = vsel %vm66_vm2, %v75_v14, %v103_v41  ;;  %286 = vrcp.f32 %v103_v41  ;;  %v104_v45 = vsub.f32 %v103_v41, %v75_v14 }
  0x55   : > { %v109_v43 = vsub.f32 %v75_v14, %v358_v42 }
  0x57   : > { %288 = vrcp.f32 %v109_v43 }
  0x5e   : > { %v287_v46 = vpop.eup %286 }
  0x5f   : > { %v106_v49 = vmul.f32 %v287_v46, %v104_v45 }
  0x61   : > { %v289_v50 = vpop.eup %288  ;;  %v108_v54 = vsel %vm66_vm2, 0.0, %v106_v49 }
  0x62   : > { %v122_v51 = vmul.f32 %v289_v50, %v120_v48  ;;  %v138_v56 = vsel %vm364_vm10, %v108_v54, 0.0 }
  0x64   : > { %v123_v53 = vsel %vm66_vm2, 0.0, %v122_v51 }
  0x65   : > { %v128_v55 = vsel %vm364_vm10, %v123_v53, 0.0 }
  0x66   : > { %129 = vadd.xlane.f32.xlu0 %v128_v55 }
  0x6a   : > { %139 = vadd.xlane.f32.xlu0 %v138_v56 }
  0xf3   : > { %v130_v57 = vpop.xlane.xlu0 %129 }
  0xf4   : > { %131 = vst [vmem:[#allocation5] sm:$0xff] %v130_v57 }
  0xf5   : > { %133 = vst [vmem:[%s132_s13] sm:$0x1] %v323_v58 }
  0xf7   : > { %v140_v60 = vpop.xlane.xlu0 %139 }
  0xf8   : > { %v146_v61 = vsel %vm364_vm10, %v140_v60, %v145_v59 }
  0xf9   : > { %147 = vst [vmem:[#allocation2] sm:$0x1] %v146_v61 }
  0xfc   : > { %v154_v63 = vld [vmem:[%s149_s15] sm:$0xff]  ;;  %s166_s15 = smov %s149_s15 }
  0xfd   : > { %v156_v0 = vmul.f32 %v155_v62, %v154_v63  ;;  %v174_v11 = vld [vmem:[%s166_s15] sm:$0xff] }
  0xff   : > { %v158_v1 = vsel %vm157_vm11, %v156_v0, 0.0 }
 0x100   : > { %v159_v2 = vrot.slane %v158_v1, 4  ;;  %v201_v4 = vld [vmem:[#allocation2] sm:$0x1] (%p42_p0) }
 0x101   :  { %203 = vst [vmem:[#allocation3] sm:$0x1] (%p42_p0), %v201_v4 }
 0x102   : > { %v160_v3 = vadd.f32 %v159_v2, %v158_v1 }
 0x104   : > { %v161_v6 = vrot.slane %v160_v3, 2 }
 0x106   : > { %v162_v7 = vadd.f32 %v161_v6, %v160_v3 }
 0x108   : > { %v163_v8 = vrot.slane %v162_v7, 1 }
 0x10a   : > { %v164_v9 = vadd.f32 %v163_v8, %v162_v7 }
 0x10c   : > { %v170_v10 = vmul.f32 %v164_v9, %v140_v60 }
 0x10e   : > { %v175_v13 = vmul.f32 %v174_v11, %v170_v10 }
 0x110   : > { %v179_v14 = vsub.f32 %v176_v12, %v175_v13 }
 0x112   : > { %v180_v15 = vsel %vm178_vm13, %v179_v14, %v176_v12 }
 0x113   : > { %v188_v16 = vsel %vm187_vm14, %v174_v11, %v180_v15 }
 0x114   : > { %189 = vst [vmem:[%s165_s14] sm:$0xff] %v188_v16 }
 0x117   :  { %44 = sbr.rel (!%p42_p0) target bundleno = 3 (0x3), region = 105 }
 0x11b   : > { %v191_v17 = vld [vmem:[%s190_s16] ss:$0 sm:$0xff] }
 0x11c   : > { %v196_v18 = vsel %vm364_vm10, %v358_v42, %v191_v17 }
 0x11d   : > { %197 = vst [vmem:[%s190_s16] sm:$0x1] %v196_v18 }
 0x124   :  { %v231_v5 = vld [vmem:[#allocation1] sm:$0xff] }
 0x125   :  { %232 = vst [vmem:[%s406_s1] sm:$0xff] %v231_v5 }
 0x126   :  { %301 = shalt.err (!%p298_p5)
}
 0x127   :  { %s302_s25 = scalar_lea.hbm %s407_s2, 16 }
 0x128   :  { %p303_p6 = scmp.ne.s32.totalorder %s407_s2, %s302_s25  ;;  %p306_p7 = scmp.lt.u32.totalorder %s302_s25, %s407_s2 }
 0x12a   :  { %p308_p8 = pnand %p306_p7, %p303_p6 }
 0x12c   :  { %311 = shalt.err (!%p308_p8)
}
 0x12d   :  { %245 = dma.vmem_to_hbm [thread:$0]  %s243_s20, 16, %s407_s2, [#allocation4]  }
 0x12e   :  { %316 = dma.done.wait [#allocation4], 16  }
 0x12f   :  { %317 = vsyncadd [#allocation4], 4294967280 }
 0x130   :  { %249 = vsyncpa [#allocation4], 1 }

// kernel: custom-call.68
= control target key start
LH: loop header
LB: loop body
LE: loop exit
PB: predicated region body
PF: predicated region fallthrough
CT: control target
= control target key end

     0   :  { %v321_v1 = vmov 0.0   ;;  %s341_s11 = smov 0   ;;  %s394_s0 = inlined_call_operand.vmem [shape: f32[8,4], index: 0, kind: input, shape index: {}]   ;;  %s395_s1 = inlined_call_operand.vmem [shape: f32[8,4], index: 1, kind: output, shape index: {0}]   ;;  %s396_s2 = inlined_call_operand.vmem [shape: f32[4], index: 2, kind: output, shape index: {1}]  }
   0x1   :  { %v31_v0 = vld [vmem:[%s394_s0] sm:$0xff]  ;;  %38 = vst [vmem:[#allocation2] sm:$0x1] %v321_v1 }
   0x2   :  { %37 = vst [vmem:[#allocation1] sm:$0xff] %v31_v0 }
   0x3 LB: > { %v46_v2 = vlaneseq  ;;  %v349_v5 = vstv %s319_s11  ;;  %s73_s0 = scalar_lea.vmem [#allocation1], %s319_s11  ;;  %s109_s12 = smov [#allocation1]  ;;  %v322_v58 = vmov 1.0   ;;  %s319_s11 = sphi %s341_s11, %s44_s11  }
   0x4   : > { %s131_s13 = scalar_lea.vmem [#allocation4], %s319_s11  ;;  %s147_s14 = smov [#allocation1] }
   0x5   : > { %v346_v4 = vshrl.u32 %v46_v2, 7  ;;  %v125_v47 = vand.u32 127, %v46_v2  ;;  %s148_s15 = smov [#allocation4] }
   0x7   : > { %vm50_vm0 = vcmp.gt.s32.totalorder %v346_v4, %v349_v5  ;;  %v112_v4 = vmov %v346_v4  ;;  %vm362_vm10 = vcmp.eq.s32.totalorder %v125_v47, %v349_v5  ;;  %vm177_vm13 = vcmp.gt.s32.totalorder %v125_v47, %v349_v5 }
   0x8   : > { %vm116_vm7 = vcmp.gt.s32.totalorder %v112_v4, %v349_v5  ;;  %vm117_vm8 = vcmp.lt.s32.totalorder %v112_v4, 8  ;;  %v144_v59 = vld [vmem:[#allocation2] ss:$0 sm:$0xff]  ;;  %v151_v4 = vmov %v346_v4 }
   0x9   : > { %v45_v3 = vld [vmem:[#allocation1] sm:$0xff]  ;;  %vm118_vm9 = vmand %vm116_vm7, %vm117_vm8  ;;  %vm156_vm11 = vcmp.lt.s32.totalorder %v151_v4, 8  ;;  %v168_v4 = vmov %v346_v4 }
   0xa   : > { %v53_v6 = vsel %vm50_vm0, %v45_v3, 0.0  ;;  %v74_v14 = vld [vmem:[%s73_s0] ss:$0 sm:$0xff]  ;;  %vm185_vm12 = vcmp.ge.s32.totalorder %v168_v4, %v349_v5 }
   0xb   : > { %v54_v7 = vmul.f32 %v53_v6, %v53_v6  ;;  %v75_v15 = vand.u32 2147483647, %v74_v14  ;;  %vm100_vm6 = vcmp.lt.f32.partialorder %v74_v14, 0.0  ;;  %v113_v44 = vld [vmem:[%s109_s12] sm:$0xff]  ;;  %vm186_vm14 = vmand %vm362_vm10, %vm185_vm12 }
   0xc   : > { %v119_v48 = vsel %vm118_vm9, %v113_v44, 0.0  ;;  %v154_v62 = vld [vmem:[%s147_s14] sm:$0xff]  ;;  %s164_s14 = smov %s147_s14 }
   0xd   : > { %v55_v8 = vrot.slane %v54_v7, 4  ;;  %v76_v20 = vmax.f32 %v75_v15, 0.0  ;;  %s189_s16 = scalar_lea.vmem %s164_s14, %s319_s11  ;;  %s44_s11 = sadd.s32 1, %s319_s11  }
   0xe   : > { %p41_p0 = scmp.ge.s32.totalorder %s44_s11, 4  }
   0xf   : > { %v56_v9 = vadd.f32 %v55_v8, %v54_v7 }
  0x11   : > { %v57_v10 = vrot.slane %v56_v9, 2 }
  0x13   : > { %v58_v11 = vadd.f32 %v57_v10, %v56_v9 }
  0x15   : > { %v59_v12 = vrot.slane %v58_v11, 1 }
  0x17   : > { %v60_v13 = vadd.f32 %v59_v12, %v58_v11  ;;  %v175_v12 = vld [vmem:[%s164_s14] sm:$0xff] }
  0x19   : > { %303 = vrsqrt.f32 %v60_v13  ;;  %vm63_vm1 = vcmp.eq.f32.partialorder %v60_v13, inf  ;;  %v66_v17 = vand.u32 2147483648, %v60_v13  ;;  %vm65_vm2 = vcmp.eq.f32.partialorder %v60_v13, 0.0 }
  0x23   : > { %v304_v16 = vpop.eup %303 }
  0x24   : > { %v62_v18 = vmul.f32 %v304_v16, %v60_v13 }
  0x26   : > { %v64_v19 = vsel %vm63_vm1, %v60_v13, %v62_v18 }
  0x27   : > { %v67_v21 = vsel %vm65_vm2, %v66_v17, %v64_v19 }
  0x28   : > { %v77_v22 = vand.u32 2147483647, %v67_v21 }
  0x2a   : > { %v78_v23 = vmax.f32 %v76_v20, %v77_v22 }
  0x2c   : > { %305 = vrcp.f32 %v78_v23  ;;  %vm90_vm5 = vcmp.eq.f32.partialorder %v78_v23, 0.0 }
  0x36   : > { %v306_v24 = vpop.eup %305 }
  0x37   : > { %v80_v25 = vmul.f32 %v306_v24, %v75_v15  ;;  %v83_v26 = vmul.f32 0.0, %v306_v24  ;;  %v87_v27 = vmul.f32 %v306_v24, %v77_v22 }
  0x39   : > { %v81_v28 = vmul.f32 %v80_v25, %v80_v25  ;;  %v84_v29 = vmul.f32 %v83_v26, %v83_v26  ;;  %v88_v30 = vmul.f32 %v87_v27, %v87_v27 }
  0x3b   : > { %v85_v31 = vadd.f32 %v84_v29, %v81_v28 }
  0x3d   : > { %v89_v32 = vadd.f32 %v88_v30, %v85_v31 }
  0x3f   : > { %307 = vrsqrt.f32 %v89_v32  ;;  %vm93_vm3 = vcmp.eq.f32.partialorder %v89_v32, inf  ;;  %v96_v34 = vand.u32 2147483648, %v89_v32  ;;  %vm95_vm4 = vcmp.eq.f32.partialorder %v89_v32, 0.0 }
  0x49   : > { %v308_v33 = vpop.eup %307 }
  0x4a   : > { %v92_v35 = vmul.f32 %v308_v33, %v89_v32 }
  0x4c   : > { %v94_v36 = vsel %vm93_vm3, %v89_v32, %v92_v35 }
  0x4d   : > { %v97_v37 = vsel %vm95_vm4, %v96_v34, %v94_v36 }
  0x4e   : > { %v98_v38 = vmul.f32 %v97_v37, %v78_v23 }
  0x50   : > { %v99_v39 = vsel %vm90_vm5, 0.0, %v98_v38 }
  0x51   : > { %v101_v40 = vxor.u32 2147483648, %v99_v39 }
  0x53   : > { %v102_v41 = vsel %vm100_vm6, %v99_v39, %v101_v40 }
  0x54   : > { %v356_v42 = vsel %vm65_vm2, %v74_v14, %v102_v41  ;;  %309 = vrcp.f32 %v102_v41  ;;  %v103_v45 = vsub.f32 %v102_v41, %v74_v14 }
  0x55   : > { %v108_v43 = vsub.f32 %v74_v14, %v356_v42 }
  0x57   : > { %311 = vrcp.f32 %v108_v43 }
  0x5e   : > { %v310_v46 = vpop.eup %309 }
  0x5f   : > { %v105_v49 = vmul.f32 %v310_v46, %v103_v45 }
  0x61   : > { %v312_v50 = vpop.eup %311  ;;  %v107_v54 = vsel %vm65_vm2, 0.0, %v105_v49 }
  0x62   : > { %v121_v51 = vmul.f32 %v312_v50, %v119_v48  ;;  %v137_v56 = vsel %vm362_vm10, %v107_v54, 0.0 }
  0x64   : > { %v122_v53 = vsel %vm65_vm2, 0.0, %v121_v51 }
  0x65   : > { %v127_v55 = vsel %vm362_vm10, %v122_v53, 0.0 }
  0x66   : > { %128 = vadd.xlane.f32.xlu0 %v127_v55 }
  0x6a   : > { %138 = vadd.xlane.f32.xlu0 %v137_v56 }
  0xf3   : > { %v129_v57 = vpop.xlane.xlu0 %128 }
  0xf4   : > { %130 = vst [vmem:[#allocation4] sm:$0xff] %v129_v57 }
  0xf5   : > { %132 = vst [vmem:[%s131_s13] sm:$0x1] %v322_v58 }
  0xf7   : > { %v139_v60 = vpop.xlane.xlu0 %138 }
  0xf8   : > { %v145_v61 = vsel %vm362_vm10, %v139_v60, %v144_v59 }
  0xf9   : > { %146 = vst [vmem:[#allocation2] sm:$0x1] %v145_v61 }
  0xfc   : > { %v153_v63 = vld [vmem:[%s148_s15] sm:$0xff]  ;;  %s165_s15 = smov %s148_s15 }
  0xfd   : > { %v155_v0 = vmul.f32 %v154_v62, %v153_v63  ;;  %v173_v11 = vld [vmem:[%s165_s15] sm:$0xff] }
  0xff   : > { %v157_v1 = vsel %vm156_vm11, %v155_v0, 0.0 }
 0x100   : > { %v158_v2 = vrot.slane %v157_v1, 4  ;;  %v200_v4 = vld [vmem:[#allocation2] sm:$0x1] (%p41_p0) }
 0x101   :  { %202 = vst [vmem:[#allocation3] sm:$0x1] (%p41_p0), %v200_v4 }
 0x102   : > { %v159_v3 = vadd.f32 %v158_v2, %v157_v1 }
 0x104   : > { %v160_v6 = vrot.slane %v159_v3, 2 }
 0x106   : > { %v161_v7 = vadd.f32 %v160_v6, %v159_v3 }
 0x108   : > { %v162_v8 = vrot.slane %v161_v7, 1  ;;  %v252_v19 = vld [vmem:[#allocation3] sm:$0x1] (%p41_p0) }
 0x109   :  { %253 = vst [vmem:[%s396_s2] sm:$0x1] (%p41_p0), %v252_v19 }
 0x10a   : > { %v163_v9 = vadd.f32 %v162_v8, %v161_v7 }
 0x10c   : > { %v169_v10 = vmul.f32 %v163_v9, %v139_v60 }
 0x10e   : > { %v174_v13 = vmul.f32 %v173_v11, %v169_v10 }
 0x110   : > { %v178_v14 = vsub.f32 %v175_v12, %v174_v13 }
 0x112   : > { %v179_v15 = vsel %vm177_vm13, %v178_v14, %v175_v12 }
 0x113   : > { %v187_v16 = vsel %vm186_vm14, %v173_v11, %v179_v15 }
 0x114   : > { %188 = vst [vmem:[%s164_s14] sm:$0xff] %v187_v16 }
 0x117   :  { %43 = sbr.rel (!%p41_p0) target bundleno = 3 (0x3), region = 139 }
 0x11b   : > { %v190_v17 = vld [vmem:[%s189_s16] ss:$0 sm:$0xff] }
 0x11c   : > { %v195_v18 = vsel %vm362_vm10, %v356_v42, %v190_v17 }
 0x11d   : > { %196 = vst [vmem:[%s189_s16] sm:$0x1] %v195_v18 }
 0x124   :  { %v230_v5 = vld [vmem:[#allocation1] sm:$0xff] }
 0x125   :  { %231 = vst [vmem:[%s395_s1] sm:$0xff] %v230_v5 }

// kernel: custom-call.69
= control target key start
LH: loop header
LB: loop body
LE: loop exit
PB: predicated region body
PF: predicated region fallthrough
CT: control target
= control target key end

     0   :  { %v68_v1 = vlaneseq  ;;  %vm82_vm1 = vcmask 31744   ;;  %s252_s0 = inlined_call_operand.vmem [shape: f32[4,4], index: 0, kind: input, shape index: {}]   ;;  %s253_s1 = inlined_call_operand.vmem [shape: f32[4,4], index: 1, kind: output, shape index: {}]  }
   0x1   :  { %v62_v0 = vld [vmem:[%s252_s0] sm:$0xf] }
   0x2   :  { %63 = vst [vmem:[#allocation1] sm:$0xf] %v62_v0  ;;  %v69_v3 = vand.u32 127, %v68_v1  ;;  %v71_v4 = vshrl.u32 %v68_v1, 7 }
   0x4   :  { %vm77_vm0 = vcmp.eq.s32.totalorder %v69_v3, 0  ;;  %vm73_vm2 = vcmp.eq.s32.totalorder %v69_v3, %v71_v4  ;;  %vm86_vm3 = vcmp.eq.s32.totalorder %v69_v3, 1  ;;  %vm97_vm4 = vcmp.eq.s32.totalorder %v69_v3, 2 }
   0x5   :  { %vm108_vm5 = vcmp.eq.s32.totalorder %v69_v3, 3 }
   0x9   :  { %v66_v2 = vld [vmem:[#allocation1] sm:$0xf] }
   0xa   :  { %67 = vst [vmem:[#allocation0] sm:$0xf] %v66_v2 }
  0x11   :  { %v74_v5 = vld [vmem:[#allocation0] sm:$0xff] }
  0x12   :  { %v81_v6 = vld [vmem:[#allocation0 + $0x1] ss:$0 sm:$0xff]  ;;  %v78_v7 = vsel %vm77_vm0, %v74_v5, 1.0  ;;  %v92_v11 = vld [vmem:[#allocation0 + $0x2] ss:$0 sm:$0xff] }
  0x13   :  { %v83_v8 = vsel %vm82_vm1, %v81_v6, 0.0  ;;  %v79_v9 = vsel %vm73_vm2, %v78_v7, 0.0  ;;  %v94_v12 = vsel %vm82_vm1, %v92_v11, 0.0  ;;  %v103_v16 = vld [vmem:[#allocation0 + $0x3] ss:$0 sm:$0xff] }
  0x14   :  { %v87_v10 = vmul.f32 %v83_v8, %v79_v9  ;;  %v105_v17 = vsel %vm82_vm1, %v103_v16, 0.0 }
  0x16   :  { %88 = vadd.xlane.f32.xlu0 %v87_v10 }
  0xa3   :  { %v89_v13 = vpop.xlane.xlu0 %88 }
  0xa4   :  { %v90_v14 = vsel %vm86_vm3, %v89_v13, %v79_v9 }
  0xa5   :  { %v98_v15 = vmul.f32 %v94_v12, %v90_v14 }
  0xa7   :  { %99 = vadd.xlane.f32.xlu0 %v98_v15 }
 0x134   :  { %v100_v18 = vpop.xlane.xlu0 %99 }
 0x135   :  { %v101_v19 = vsel %vm97_vm4, %v100_v18, %v90_v14 }
 0x136   :  { %v109_v20 = vmul.f32 %v105_v17, %v101_v19 }
 0x138   :  { %110 = vadd.xlane.f32.xlu1 %v109_v20 }
 0x1c5   :  { %v111_v21 = vpop.xlane.xlu1 %110 }
 0x1c6   :  { %v112_v22 = vsel %vm108_vm5, %v111_v21, %v101_v19 }
 0x1c7   :  { %113 = vst [vmem:[#allocation2] sm:$0xff] %v112_v22 }
 0x1ce   :  { %v117_v23 = vld [vmem:[#allocation2] sm:$0xf] }
 0x1cf   :  { %119 = vst [vmem:[#allocation3] sm:$0xf] %v117_v23 }
 0x1d6   :  { %v180_v24 = vld [vmem:[#allocation3] sm:$0xf] }
 0x1d7   :  { %181 = vst [vmem:[%s253_s1] sm:$0xf] %v180_v24 }

// kernel: custom-call.70
= control target key start
LH: loop header
LB: loop body
LE: loop exit
PB: predicated region body
PF: predicated region fallthrough
CT: control target
= control target key end

     0   :  { %v176_v0 = vmov 0.0   ;;  %vm38_vm0 = vcmask 7168   ;;  %vm56_vm1 = vcmask 15368   ;;  %vm73_vm2 = vcmask 1047553   ;;  %s193_s0 = inlined_call_operand.vmem [shape: f32[4,4], index: 0, kind: input, shape index: {}]   ;;  %s194_s1 = inlined_call_operand.vmem [shape: f32[4,4], index: 1, kind: output, shape index: {}]  }
   0x1   :  { %37 = vst [vmem:[#allocation2] sm:$0xff] %v176_v0  ;;  %v17_v2 = vld [vmem:[%s193_s0] sm:$0xf]  ;;  %vm74_vm3 = vmand %vm56_vm1, %vm73_vm2  ;;  %vm78_vm4 = vcmask 23568   ;;  %vm95_vm5 = vcmask 1047554   ;;  %vm100_vm7 = vcmask 31768  }
   0x2   :  { %18 = vst [vmem:[#allocation1] sm:$0xf] %v17_v2  ;;  %vm96_vm6 = vmand %vm78_vm4, %vm95_vm5  ;;  %vm117_vm8 = vcmask 1047555  }
   0x3   :  { %vm118_vm9 = vmand %vm100_vm7, %vm117_vm8 }
   0x8   :  { %v39_v1 = vld [vmem:[#allocation2] ss:$0 sm:$0xff] }
   0x9   :  { %v41_v3 = vmul.f32 %v39_v1, %v39_v1  ;;  %v48_v4 = vmul.f32 0.0, %v39_v1  ;;  %v35_v5 = vld [vmem:[#allocation1] sm:$0xf] }
   0xa   :  { %36 = vst [vmem:[#allocation0] sm:$0xf] %v35_v5 }
   0xb   :  { %42 = vadd.xlane.f32.xlu0 %v41_v3 }
   0xf   :  { %49 = vadd.xlane.f32.xlu0 %v48_v4 }
  0x11   :  { %v40_v6 = vld [vmem:[#allocation0] ss:$0 sm:$0xff]  ;;  %v60_v18 = vld [vmem:[#allocation0 + $0x1] ss:$0 sm:$0xff]  ;;  %v82_v30 = vld [vmem:[#allocation0 + $0x2] ss:$0 sm:$0xff] }
  0x12   :  { %v46_v10 = vld [vmem:[#allocation0] sm:$0xff] }
  0x13   :  { %v104_v42 = vld [vmem:[#allocation0 + $0x3] ss:$0 sm:$0xff] }
  0x98   :  { %v43_v7 = vpop.xlane.xlu0 %42 }
  0x99   :  { %v44_v8 = vsub.f32 %v40_v6, %v43_v7 }
  0x9b   :  { %168 = vrsqrt.f32 %v44_v8 }
  0x9c   :  { %v50_v9 = vpop.xlane.xlu0 %49 }
  0x9d   :  { %v51_v11 = vsub.f32 %v46_v10, %v50_v9 }
  0xa5   :  { %v169_v12 = vpop.eup %168 }
  0xa6   :  { %v52_v13 = vmul.f32 %v169_v12, %v51_v11 }
  0xa8   :  { %v53_v14 = vsel %vm38_vm0, %v52_v13, 0.0 }
  0xa9   :  { %55 = vst [vmem:[#allocation2] sm:$0xff] %v53_v14 }
  0xb0   :  { %v58_v15 = vld [vmem:[#allocation2 + $0x1] ss:$0 sm:$0xff] }
  0xb1   :  { %v61_v16 = vmul.f32 %v58_v15, %v58_v15  ;;  %v68_v17 = vmul.f32 %v58_v15, %v53_v14 }
  0xb3   :  { %62 = vadd.xlane.f32.xlu1 %v61_v16 }
  0xb7   :  { %69 = vadd.xlane.f32.xlu1 %v68_v17 }
 0x140   :  { %v63_v19 = vpop.xlane.xlu1 %62 }
 0x141   :  { %v64_v20 = vsub.f32 %v60_v18, %v63_v19 }
 0x143   :  { %170 = vrsqrt.f32 %v64_v20 }
 0x144   :  { %v70_v21 = vpop.xlane.xlu1 %69 }
 0x145   :  { %v71_v22 = vsub.f32 %v46_v10, %v70_v21 }
 0x14d   :  { %v171_v23 = vpop.eup %170 }
 0x14e   :  { %v72_v24 = vmul.f32 %v171_v23, %v71_v22 }
 0x150   :  { %v75_v25 = vsel %vm74_vm3, %v72_v24, 0.0 }
 0x151   :  { %v76_v26 = vadd.f32 %v75_v25, %v53_v14 }
 0x153   :  { %77 = vst [vmem:[#allocation2] sm:$0xff] %v76_v26 }
 0x15a   :  { %v80_v27 = vld [vmem:[#allocation2 + $0x2] ss:$0 sm:$0xff] }
 0x15b   :  { %v90_v28 = vmul.f32 %v80_v27, %v76_v26  ;;  %v83_v29 = vmul.f32 %v80_v27, %v80_v27 }
 0x15d   :  { %91 = vadd.xlane.f32.xlu1 %v90_v28  ;;  %84 = vadd.xlane.f32.xlu0 %v83_v29 }
 0x1ea   :  { %v85_v31 = vpop.xlane.xlu0 %84  ;;  %v92_v33 = vpop.xlane.xlu1 %91 }
 0x1eb   :  { %v86_v32 = vsub.f32 %v82_v30, %v85_v31  ;;  %v93_v34 = vsub.f32 %v46_v10, %v92_v33 }
 0x1ed   :  { %172 = vrsqrt.f32 %v86_v32 }
 0x1f7   :  { %v173_v35 = vpop.eup %172 }
 0x1f8   :  { %v94_v36 = vmul.f32 %v173_v35, %v93_v34 }
 0x1fa   :  { %v97_v37 = vsel %vm96_vm6, %v94_v36, 0.0 }
 0x1fb   :  { %v98_v38 = vadd.f32 %v97_v37, %v76_v26 }
 0x1fd   :  { %99 = vst [vmem:[#allocation2] sm:$0xff] %v98_v38 }
 0x204   :  { %v102_v39 = vld [vmem:[#allocation2 + $0x3] ss:$0 sm:$0xff] }
 0x205   :  { %v112_v40 = vmul.f32 %v102_v39, %v98_v38  ;;  %v105_v41 = vmul.f32 %v102_v39, %v102_v39 }
 0x207   :  { %113 = vadd.xlane.f32.xlu1 %v112_v40  ;;  %106 = vadd.xlane.f32.xlu0 %v105_v41 }
 0x294   :  { %v107_v43 = vpop.xlane.xlu0 %106  ;;  %v114_v45 = vpop.xlane.xlu1 %113 }
 0x295   :  { %v108_v44 = vsub.f32 %v104_v42, %v107_v43  ;;  %v115_v46 = vsub.f32 %v46_v10, %v114_v45 }
 0x297   :  { %174 = vrsqrt.f32 %v108_v44 }
 0x2a1   :  { %v175_v47 = vpop.eup %174 }
 0x2a2   :  { %v116_v48 = vmul.f32 %v175_v47, %v115_v46 }
 0x2a4   :  { %v119_v49 = vsel %vm118_vm9, %v116_v48, 0.0 }
 0x2a5   :  { %v120_v50 = vadd.f32 %v119_v49, %v98_v38 }
 0x2a7   :  { %121 = vst [vmem:[#allocation2] sm:$0xff] %v120_v50 }
 0x2ae   :  { %v125_v51 = vld [vmem:[#allocation2] sm:$0xf] }
 0x2af   :  { %127 = vst [vmem:[#allocation3] sm:$0xf] %v125_v51 }
 0x2b6   :  { %v143_v52 = vld [vmem:[#allocation3] sm:$0xf] }
 0x2b7   :  { %144 = vst [vmem:[%s194_s1] sm:$0xf] %v143_v52 }

// kernel: custom-call.71
= control target key start
LH: loop header
LB: loop body
LE: loop exit
PB: predicated region body
PF: predicated region fallthrough
CT: control target
= control target key end

     0   :  { %v37_v1 = vlaneseq  ;;  %v148_v11 = vmov -1.0   ;;  %s165_s0 = inlined_call_operand.vmem [shape: f32[1,4,4], index: 0, kind: input, shape index: {}]   ;;  %s166_s1 = inlined_call_operand.vmem [shape: f32[1,4,4], index: 1, kind: output, shape index: {}]  }
   0x1   :  { %v17_v0 = vld [vmem:[%s165_s0] sm:$0xf] }
   0x2   :  { %18 = vst [vmem:[#allocation1] sm:$0xf] %v17_v0  ;;  %v38_v3 = vand.u32 127, %v37_v1  ;;  %v41_v4 = vshrl.u32 %v37_v1, 7 }
   0x4   :  { %vm39_vm0 = vcmp.lt.s32.totalorder %v38_v3, 4  ;;  %vm48_vm1 = vcmp.ge.s32.totalorder %v41_v4, %v38_v3  ;;  %vm43_vm2 = vcmp.eq.s32.totalorder %v41_v4, %v38_v3  ;;  %vm62_vm4 = vcmp.eq.s32.totalorder %v38_v3, 0 }
   0x5   :  { %vm49_vm3 = vmand %vm48_vm1, %vm39_vm0  ;;  %vm59_vm5 = vcmp.eq.s32.totalorder %v38_v3, %v41_v4  ;;  %v63_v12 = vsel %vm62_vm4, 1.0, %v148_v11  ;;  %vm70_vm6 = vcmp.eq.s32.totalorder %v38_v3, 1  ;;  %vm80_vm7 = vcmp.eq.s32.totalorder %v38_v3, 2 }
   0x6   :  { %v64_v13 = vsel %vm59_vm5, %v63_v12, 0.0  ;;  %vm90_vm8 = vcmp.eq.s32.totalorder %v38_v3, 3 }
   0x9   :  { %v35_v2 = vld [vmem:[#allocation1] sm:$0xf] }
   0xa   :  { %36 = vst [vmem:[#allocation0] sm:$0xf] %v35_v2 }
  0x11   :  { %v44_v5 = vld [vmem:[#allocation0] sm:$0xff] }
  0x12   :  { %v45_v6 = vsel %vm43_vm2, %v44_v5, 0.0  ;;  %v50_v7 = vsel %vm49_vm3, %v44_v5, 0.0 }
  0x13   :  { %46 = vadd.xlane.f32.xlu0 %v45_v6 }
  0xa0   :  { %v47_v8 = vpop.xlane.xlu0 %46 }
  0xa1   :  { %146 = vrcp.f32 %v47_v8  ;;  %vm97_vm9 = vweird.f32 %v47_v8 }
  0xab   :  { %v147_v9 = vpop.eup %146 }
  0xac   :  { %v52_v10 = vmul.f32 %v147_v9, %v50_v7 }
  0xae   :  { %53 = vst [vmem:[#allocation4] sm:$0xff] %v52_v10 }
  0xb5   :  { %v66_v14 = vld [vmem:[#allocation4 + $0x1] ss:$0 sm:$0xff]  ;;  %v76_v17 = vld [vmem:[#allocation4 + $0x2] ss:$0 sm:$0xff]  ;;  %v86_v22 = vld [vmem:[#allocation4 + $0x3] ss:$0 sm:$0xff] }
  0xb6   :  { %v67_v15 = vxor.u32 2147483648, %v66_v14  ;;  %v77_v19 = vxor.u32 2147483648, %v76_v17  ;;  %v87_v24 = vxor.u32 2147483648, %v86_v22 }
  0xb8   :  { %v71_v16 = vmul.f32 %v67_v15, %v64_v13 }
  0xba   :  { %72 = vadd.xlane.f32.xlu0 %v71_v16 }
 0x147   :  { %v73_v18 = vpop.xlane.xlu0 %72 }
 0x148   :  { %v74_v20 = vsel %vm70_vm6, %v73_v18, %v64_v13 }
 0x149   :  { %v81_v21 = vmul.f32 %v77_v19, %v74_v20 }
 0x14b   :  { %82 = vadd.xlane.f32.xlu1 %v81_v21 }
 0x1d8   :  { %v83_v23 = vpop.xlane.xlu1 %82 }
 0x1d9   :  { %v84_v25 = vsel %vm80_vm7, %v83_v23, %v74_v20 }
 0x1da   :  { %v91_v26 = vmul.f32 %v87_v24, %v84_v25 }
 0x1dc   :  { %92 = vadd.xlane.f32.xlu1 %v91_v26 }
 0x269   :  { %v93_v27 = vpop.xlane.xlu1 %92 }
 0x26a   :  { %v94_v28 = vsel %vm90_vm8, %v93_v27, %v84_v25 }
 0x26b   :  { %v96_v29 = vmul.f32 %v147_v9, %v94_v28 }
 0x26d   :  { %v98_v30 = vsel %vm97_vm9, %v94_v28, %v96_v29 }
 0x26e   :  { %99 = vst [vmem:[#allocation2] sm:$0xff] %v98_v30 }
 0x275   :  { %v103_v31 = vld [vmem:[#allocation2] sm:$0xf] }
 0x276   :  { %105 = vst [vmem:[#allocation3] sm:$0xf] %v103_v31 }
 0x27d   :  { %v121_v32 = vld [vmem:[#allocation3] sm:$0xf] }
 0x27e   :  { %122 = vst [vmem:[%s166_s1] sm:$0xf] %v121_v32 }

// kernel: custom-call.49
= control target key start
LH: loop header
LB: loop body
LE: loop exit
PB: predicated region body
PF: predicated region fallthrough
CT: control target
= control target key end

     0   :  { %11 = vsyncpa [#allocation14], 0  ;;  %s1850_s0 = inlined_call_operand.vmem [shape: f32[2,2], index: 0, kind: input, shape index: {}]   ;;  %s1851_s1 = inlined_call_operand.vmem [shape: f32[2,2], index: 1, kind: input, shape index: {}]   ;;  %s1852_s2 = inlined_call_operand.vmem [shape: f32[2,2], index: 2, kind: input, shape index: {}]   ;;  %s1853_s3 = inlined_call_operand.vmem [shape: f32[2,2], index: 3, kind: input, shape index: {}]   ;;  %s1854_s4 = inlined_call_operand.vmem [shape: f32[2], index: 4, kind: output, shape index: {0}]   ;;  %s1855_s5 = inlined_call_operand.vmem [shape: f32[2], index: 5, kind: output, shape index: {1}]   ;;  %s1856_s6 = inlined_call_operand.hbm [shape: f32[2,2], index: 6, kind: output, shape index: {2}]   ;;  %s1857_s7 = inlined_call_operand.hbm [shape: f32[2,2], index: 7, kind: output, shape index: {3}]   ;;  %s1858_s8 = inlined_call_operand.hbm [shape: f32[2,2], index: 8, kind: output, shape index: {4}]   ;;  %s1859_s9 = inlined_call_operand.hbm [shape: f32[2,2], index: 9, kind: output, shape index: {5}]  }
   0x1   :  { %12 = vsyncpa [#allocation17], 0 }
   0x2   :  { %13 = vsyncpa [#allocation22], 0  ;;  %v74_v0 = vld [vmem:[%s1850_s0] sm:$0x3]  ;;  %v295_v2 = vlaneseq  ;;  %v1527_v7 = vmov 0.0   ;;  %s294_s0 = smov [#allocation12] }
   0x3   :  { %v136_v1 = vld [vmem:[%s1851_s1] sm:$0x3]  ;;  %75 = vst [vmem:[#allocation1] sm:$0x3] %v74_v0  ;;  %290 = vst [vmem:[#allocation12] sm:$0xff] %v1527_v7  ;;  %s307_s1 = smov [#allocation20] }
   0x4   :  { %137 = vst [vmem:[#allocation3] sm:$0x3] %v136_v1  ;;  %v198_v3 = vld [vmem:[%s1852_s2] sm:$0x3]  ;;  %v1596_v5 = vand.u32 127, %v295_v2  ;;  %v1598_v6 = vshrl.u32 %v295_v2, 7 }
   0x5   :  { %v260_v4 = vld [vmem:[%s1853_s3] sm:$0x3]  ;;  %199 = vst [vmem:[#allocation5] sm:$0x3] %v198_v3  ;;  %291 = vst [vmem:[#allocation15] sm:$0xff] %v1527_v7  ;;  %s278_s2 = smov [#allocation23] }
   0x6   :  { %261 = vst [vmem:[#allocation7] sm:$0x3] %v260_v4  ;;  %292 = vst [vmem:[#allocation18] sm:$0xff] %v1527_v7  ;;  %v297_v5 = vmov %v1596_v5  ;;  %v300_v6 = vmov %v1598_v6  ;;  %s281_s3 = smov [#allocation24]  ;;  %s284_s17 = smov [#allocation25]  ;;  %vm1223_vm2 = vcmp.lt.s32.totalorder %v1596_v5, 2 }
   0x7   :  { %293 = vst [vmem:[#allocation20] sm:$0xff] %v1527_v7  ;;  %v310_v5 = vmov %v1596_v5  ;;  %v313_v6 = vmov %v1598_v6  ;;  %vm304_vm0 = vcmp.eq.s32.totalorder %v300_v6, %v297_v5  ;;  %s287_s18 = smov [#allocation26]  ;;  %s1219_s19 = smov [#allocation23] }
   0x8   :  { %vm317_vm1 = vcmp.eq.s32.totalorder %v313_v6, %v310_v5  ;;  %s1236_s20 = smov [#allocation24]  ;;  %v1215_v5 = vmov %v1596_v5  ;;  %v1218_v6 = vmov %v1598_v6  ;;  %s1253_s21 = smov [#allocation25] }
   0x9   :  { %s1270_s22 = smov [#allocation26]  ;;  %vm1228_vm3 = vcmp.eq.s32.totalorder %v1218_v6, %v1215_v5  ;;  %v1266_v5 = vmov %v1596_v5  ;;  %v1235_v6 = vmov %v1598_v6 }
   0xa   :  { %v264_v8 = vld [vmem:[#allocation1] sm:$0x3]  ;;  %v301_v12 = vld [vmem:[%s294_s0] sm:$0x3]  ;;  %v1232_v5 = vmov %v1596_v5  ;;  %v1269_v6 = vmov %v1598_v6 }
   0xb   :  { %v268_v9 = vld [vmem:[#allocation3] sm:$0x3]  ;;  %265 = vst [vmem:[#allocation0] sm:$0x3] %v264_v8  ;;  %v305_v14 = vsel %vm304_vm0, 1.0, %v301_v12  ;;  %v1249_v5 = vmov %v1596_v5  ;;  %v1252_v6 = vmov %v1598_v6  ;;  %vm1279_vm4 = vcmp.eq.s32.totalorder %v1269_v6, %v1266_v5 }
   0xc   :  { %269 = vst [vmem:[#allocation2] sm:$0x3] %v268_v9  ;;  %v272_v10 = vld [vmem:[#allocation5] sm:$0x3]  ;;  %306 = vst [vmem:[%s294_s0] sm:$0x3] %v305_v14 }
   0xd   :  { %v276_v11 = vld [vmem:[#allocation7] sm:$0x3]  ;;  %273 = vst [vmem:[#allocation4] sm:$0x3] %v272_v10 }
   0xe   :  { %277 = vst [vmem:[#allocation6] sm:$0x3] %v276_v11  ;;  %v314_v13 = vld [vmem:[%s307_s1] sm:$0x3] }
   0xf   :  { %v318_v15 = vsel %vm317_vm1, 1.0, %v314_v13 }
  0x10   :  { %319 = vst [vmem:[%s307_s1] sm:$0x3] %v318_v15 }
  0x12   :  { %v279_v16 = vld [vmem:[#allocation0] sm:$0xff] }
  0x13   :  { %v282_v17 = vld [vmem:[#allocation2] sm:$0xff]  ;;  %280 = vst [vmem:[%s278_s2] sm:$0xff] %v279_v16 }
  0x14   :  { %283 = vst [vmem:[%s281_s3] sm:$0xff] %v282_v17  ;;  %v285_v18 = vld [vmem:[#allocation4] sm:$0xff] }
  0x15   :  { %v288_v19 = vld [vmem:[#allocation6] sm:$0xff]  ;;  %286 = vst [vmem:[%s284_s17] sm:$0xff] %v285_v18 }
  0x16   :  { %289 = vst [vmem:[%s287_s18] sm:$0xff] %v288_v19 }
  0x1a   :  { %v1225_v20 = vld [vmem:[%s1219_s19] sm:$0x3] }
  0x1b   :  { %v1242_v21 = vld [vmem:[%s1236_s20] sm:$0x3]  ;;  %v1226_v22 = vsel %vm1223_vm2, %v1225_v20, 0.0 }
  0x1c   :  { %v1243_v23 = vsel %vm1223_vm2, %v1242_v21, 0.0  ;;  %v1259_v24 = vld [vmem:[%s1253_s21] sm:$0x3]  ;;  %v1227_v26 = vmul.f32 %v1226_v22, %v1226_v22 }
  0x1d   :  { %v1276_v25 = vld [vmem:[%s1270_s22] sm:$0x3]  ;;  %v1244_v27 = vmul.f32 %v1243_v23, %v1243_v23  ;;  %v1260_v28 = vsel %vm1223_vm2, %v1259_v24, 0.0 }
  0x1e   :  { %v1277_v29 = vsel %vm1223_vm2, %v1276_v25, 0.0  ;;  %v1261_v30 = vmul.f32 %v1260_v28, %v1260_v28  ;;  %v1229_v33 = vsel %vm1228_vm3, 0.0, %v1227_v26 }
  0x1f   :  { %v1246_v31 = vadd.f32 %v1244_v27, %v1227_v26  ;;  %v1278_v32 = vmul.f32 %v1277_v29, %v1277_v29  ;;  %v1245_v34 = vadd.f32 %v1244_v27, %v1229_v33 }
  0x21   :  { %v1263_v35 = vadd.f32 %v1261_v30, %v1246_v31  ;;  %v1262_v36 = vadd.f32 %v1261_v30, %v1245_v34  ;;  %v1280_v37 = vsel %vm1279_vm4, 0.0, %v1278_v32 }
  0x23   :  { %v1282_v38 = vadd.f32 %v1278_v32, %v1263_v35  ;;  %v1281_v39 = vadd.f32 %v1280_v37, %v1262_v36 }
  0x25   :  { %1283 = vadd.xlane.f32.xlu0 %v1282_v38 }
  0x29   :  { %1291 = vadd.xlane.f32.xlu0 %v1281_v39 }
  0xb2   :  { %v1284_v40 = vpop.xlane.xlu0 %1283 }
  0xb3   :  { %v1285_v41 = vrot.slane %v1284_v40, 4 }
  0xb5   :  { %v1286_v42 = vadd.f32 %v1285_v41, %v1284_v40 }
  0xb6   :  { %v1292_v43 = vpop.xlane.xlu0 %1291 }
  0xb7   :  { %v1287_v44 = vrot.slane %v1286_v42, 2  ;;  %v1293_v45 = vrot.slane %v1292_v43, 4 }
  0xb9   :  { %v1294_v46 = vadd.f32 %v1293_v45, %v1292_v43  ;;  %v1288_v47 = vadd.f32 %v1287_v44, %v1286_v42 }
  0xbb   :  { %v1295_v48 = vrot.slane %v1294_v46, 2  ;;  %v1289_v50 = vrot.slane %v1288_v47, 1 }
  0xbd   :  { %v1296_v49 = vadd.f32 %v1295_v48, %v1294_v46  ;;  %v1290_v53 = vadd.f32 %v1289_v50, %v1288_v47 }
  0xbf   :  { %v1297_v51 = vrot.slane %v1296_v49, 1 }
  0xc1   :  { %v1298_v52 = vadd.f32 %v1297_v51, %v1296_v49 }
  0xc3   :  { %1378 = vpush %v1298_v52 }
  0xc4   :  { %1380 = vpush %v1290_v53 }
  0xf4   :  { %s1379_s23 = spop %1378 }
  0xf5   :  { %s1381_s24 = spop %1380 }
  0xf6   :  { %s1301_s25 = smul.f32 1e-10, %s1381_s24 }
  0xf8   :  { %p1302_p0 = scmp.le.f32.partialorder %s1379_s23, %s1301_s25 }
  0xf9   :  { %s1622_s26 = smov (!%p1302_p0), 0  }
  0xfa   :  { %1305 = sbr.rel (%p1302_p0) target bundleno = 932 (0x3a4), region = 324 }
 0x101 LB: > { %s1627_s27 = smov 0   ;;  %s1521_s26 = sphi %s1622_s26, %s1860_s26  }
 0x102 LB: >> { %s424_s28 = smov [#allocation23]  ;;  %v428_v5 = vmov %v1596_v5  ;;  %v431_v6 = vmov %v1598_v6  ;;  %s444_s29 = smov [#allocation24]  ;;  %vm747_vm14 = vcmp.eq.s32.totalorder %v1598_v6, 0  ;;  %vm759_vm15 = vcmp.eq.s32.totalorder %v1598_v6, 1  ;;  %s1525_s27 = sphi %s1627_s27, %s423_s27  }
 0x103   : >> { %v448_v5 = vmov %v1596_v5  ;;  %v451_v6 = vmov %v1598_v6  ;;  %v432_v54 = vld [vmem:[%s424_s28] sm:$0x3]  ;;  %vm435_vm5 = vcmp.eq.s32.totalorder %v431_v6, %v428_v5  ;;  %s464_s30 = smov [#allocation26]  ;;  %s425_s10 = smov [#allocation27] }
 0x104   : >> { %vm455_vm6 = vcmp.eq.s32.totalorder %v451_v6, %v448_v5  ;;  %v468_v5 = vmov %v1596_v5  ;;  %v471_v6 = vmov %v1598_v6  ;;  %v436_v55 = vsel %vm435_vm5, %v432_v54, 0.0  ;;  %v452_v56 = vld [vmem:[%s444_s29] sm:$0x3]  ;;  %s445_s11 = smov [#allocation28]  ;;  %s465_s12 = smov [#allocation29] }
 0x105   : >> { %vm475_vm7 = vcmp.eq.s32.totalorder %v471_v6, %v468_v5  ;;  %v437_v57 = vrot.slane %v436_v55, 4  ;;  %v456_v58 = vsel %vm455_vm6, %v452_v56, 0.0  ;;  %v472_v59 = vld [vmem:[%s464_s30] sm:$0x3]  ;;  %s488_s13 = smov [#allocation28]  ;;  %s486_s14 = smov [#allocation27]  ;;  %v537_v5 = vmov %v1596_v5 }
 0x106   : >> { %v457_v60 = vrot.slane %v456_v58, 4  ;;  %v476_v61 = vsel %vm475_vm7, %v472_v59, 0.0  ;;  %s490_s15 = smov [#allocation29]  ;;  %s525_s16 = smov [#allocation30]  ;;  %v540_v6 = vmov %v1598_v6  ;;  %v552_v5 = vmov %v1596_v5 }
 0x107   : >> { %v438_v62 = vadd.f32 %v437_v57, %v436_v55  ;;  %v477_v63 = vrot.slane %v476_v61, 4  ;;  %s527_s0 = smov [#allocation31]  ;;  %s484_s1 = smov [#allocation32]  ;;  %v555_v6 = vmov %v1598_v6  ;;  %vm542_vm12 = vcmp.eq.s32.totalorder %v540_v6, %v537_v5 }
 0x108   : >> { %v458_v0 = vadd.f32 %v457_v60, %v456_v58  ;;  %s485_s2 = smov [#allocation33]  ;;  %s529_s1 = smov %s484_s1  ;;  %vm557_vm13 = vcmp.eq.s32.totalorder %v555_v6, %v552_v5  ;;  %v650_v5 = vmov %v1596_v5  ;;  %v653_v6 = vmov %v1598_v6 }
 0x109   : >> { %v439_v1 = vrot.slane %v438_v62, 2  ;;  %v478_v2 = vadd.f32 %v477_v63, %v476_v61  ;;  %s531_s2 = smov %s485_s2  ;;  %s533_s3 = smov [#allocation32]  ;;  %v664_v5 = vmov %v1596_v5  ;;  %v667_v6 = vmov %v1598_v6 }
 0x10a   : >> { %v459_v3 = vrot.slane %v458_v0, 2  ;;  %s548_s17 = smov [#allocation33]  ;;  %s546_s18 = smov [#allocation34]  ;;  %vm657_vm0 = vcmp.eq.s32.totalorder %v653_v6, %v650_v5  ;;  %v623_v5 = vmov %v1596_v5  ;;  %v626_v6 = vmov %v1598_v6 }
 0x10b   : >> { %v440_v4 = vadd.f32 %v439_v1, %v438_v62  ;;  %v479_v7 = vrot.slane %v478_v2, 2  ;;  %s563_s19 = smov [#allocation34]  ;;  %s1642_s20 = smov [#allocation23]  ;;  %v637_v5 = vmov %v1596_v5  ;;  %v640_v6 = vmov %v1598_v6 }
 0x10c   : >> { %v460_v8 = vadd.f32 %v459_v3, %v458_v0  ;;  %s561_s21 = smov [#allocation35]  ;;  %s1644_s22 = smov [#allocation24]  ;;  %v571_v53 = vld [vmem:[%s1642_s20] sm:$0x3]  ;;  %vm672_vm1 = vcmp.eq.s32.totalorder %v667_v6, %v664_v5  ;;  %vm631_vm3 = vcmp.eq.s32.totalorder %v626_v6, %v623_v5  ;;  %vm644_vm4 = vcmp.eq.s32.totalorder %v640_v6, %v637_v5 }
 0x10d   : >> { %v441_v9 = vrot.slane %v440_v4, 1  ;;  %v480_v10 = vadd.f32 %v479_v7, %v478_v2  ;;  %s1646_s23 = smov [#allocation25]  ;;  %s1648_s24 = smov [#allocation26]  ;;  %v572_v54 = vld [vmem:[%s1644_s22] sm:$0x3]  ;;  %vm686_vm5 = vcmp.eq.s32.totalorder %v1596_v5, 0 }
 0x10e   : >> { %v461_v11 = vrot.slane %v460_v8, 1  ;;  %s1650_s25 = smov [#allocation12]  ;;  %s1652_s28 = smov [#allocation15]  ;;  %v573_v55 = vld [vmem:[%s1646_s23] sm:$0x3]  ;;  %vm690_vm6 = vcmp.eq.s32.totalorder %v1596_v5, 1 }
 0x10f   : >> { %v442_v12 = vadd.f32 %v441_v9, %v440_v4  ;;  %v481_v13 = vrot.slane %v480_v10, 1  ;;  %s1654_s29 = smov [#allocation18]  ;;  %s787_s30 = smov [#allocation34]  ;;  %v574_v56 = vld [vmem:[%s1648_s24] sm:$0x3] }
 0x110   : >> { %v462_v14 = vadd.f32 %v461_v11, %v460_v8  ;;  %v795_v57 = vld [vmem:[%s1650_s25] sm:$0x3]  ;;  %s423_s27 = sadd.s32 1, %s1525_s27  }
 0x111   : >> { %443 = vst [vmem:[%s425_s10] sm:$0x1] %v442_v12  ;;  %v482_v15 = vadd.f32 %v481_v13, %v480_v10  ;;  %s1658_s10 = smov [#allocation20]  ;;  %v796_v58 = vld [vmem:[%s1652_s28] sm:$0x3]  ;;  %p420_p1 = scmp.ge.s32.totalorder %s423_s27, 3  }
 0x112   : >> { %463 = vst [vmem:[%s445_s11] sm:$0x1] %v462_v14  ;;  %v797_v59 = vld [vmem:[%s1654_s29] sm:$0x3]  ;;  %s565_s11 = smov [#allocation35]  ;;  %v324_v5 = vmov (%p420_p1), %v1596_v5  ;;  %v327_v6 = vmov (%p420_p1), %v1598_v6 }
 0x113   : >> { %483 = vst [vmem:[%s465_s12] sm:$0x1] %v482_v15  ;;  %v798_v61 = vld [vmem:[%s1658_s10] sm:$0x3]  ;;  %s789_s12 = smov [#allocation35]  ;;  %v377_v5 = vmov (%p420_p1), %v1596_v5  ;;  %vm339_vm7 = vcmp.eq.s32.totalorder (%p420_p1), %v327_v6, %v324_v5  ;;  %v380_v6 = vmov (%p420_p1), %v1598_v6 }
 0x114   : > { %v343_v5 = vmov (%p420_p1), %v1596_v5  ;;  %v346_v6 = vmov (%p420_p1), %v1598_v6 }
 0x115   : > { %v360_v5 = vmov (%p420_p1), %v1596_v5  ;;  %v363_v6 = vmov (%p420_p1), %v1598_v6 }
 0x118   : >> { %v487_v18 = vld [vmem:[%s486_s14] sm:$0xff]  ;;  %s593_s14 = smov [#allocation33] }
 0x119   : >> { %v489_v16 = vld [vmem:[%s488_s13] sm:$0xff]  ;;  %v510_v31 = vand.u32 2147483647, %v487_v18  ;;  %s591_s13 = smov [#allocation32] }
 0x11a   : >> { %v493_v17 = vmul.f32 2.0, %v489_v16  ;;  %v491_v19 = vld [vmem:[%s490_s15] sm:$0xff]  ;;  %v511_v36 = vand.u32 2147483647, %v489_v16  ;;  %s1674_s15 = smov [#allocation12] }
 0x11b   : >> { %v492_v20 = vsub.f32 %v491_v19, %v487_v18  ;;  %v512_v32 = vand.u32 2147483647, %v491_v19 }
 0x11c   : >> { %1409 = vrcp.f32 %v493_v17 }
 0x11d   : >> { %v513_v35 = vmin.f32 %v510_v31, %v512_v32 }
 0x11f   : >> { %v514_v37 = vmul.f32 1.1920929e-08, %v513_v35 }
 0x121   : >> { %vm515_vm11 = vcmp.le.f32.partialorder %v511_v36, %v514_v37 }
 0x126   : >> { %v1410_v21 = vpop.eup %1409 }
 0x127   : >> { %v495_v22 = vmul.f32 %v1410_v21, %v492_v20 }
 0x129   : >> { %v497_v23 = vmul.f32 %v495_v22, %v495_v22  ;;  %vm496_vm10 = vcmp.ge.f32.partialorder %v495_v22, 0.0 }
 0x12b   : >> { %v498_v24 = vadd.f32 1.0, %v497_v23 }
 0x12d   : >> { %1411 = vrsqrt.f32 %v498_v24  ;;  %vm501_vm8 = vcmp.eq.f32.partialorder %v498_v24, inf  ;;  %v504_v26 = vand.u32 2147483648, %v498_v24  ;;  %vm503_vm9 = vcmp.eq.f32.partialorder %v498_v24, 0.0 }
 0x137   : >> { %v1412_v25 = vpop.eup %1411 }
 0x138   : >> { %v500_v27 = vmul.f32 %v1412_v25, %v498_v24 }
 0x13a   : >> { %v502_v28 = vsel %vm501_vm8, %v498_v24, %v500_v27  ;;  %vm392_vm8 = vcmp.eq.s32.totalorder (%p420_p1), %v380_v6, %v377_v5 }
 0x13b   : >> { %v505_v29 = vsel %vm503_vm9, %v504_v26, %v502_v28 }
 0x13c   : >> { %v506_v30 = vxor.u32 2147483648, %v505_v29 }
 0x13e   : >> { %v507_v33 = vsel %vm496_vm10, %v505_v29, %v506_v30 }
 0x13f   : >> { %v508_v34 = vadd.f32 %v507_v33, %v495_v22 }
 0x141   : >> { %1413 = vrcp.f32 %v508_v34 }
 0x14b   : >> { %v1414_v38 = vpop.eup %1413 }
 0x14c   : >> { %v516_v39 = vsel %vm515_vm11, 0.0, %v1414_v38 }
 0x14d   : >> { %v517_v40 = vmul.f32 %v516_v39, %v516_v39  ;;  %v521_v41 = vmul.f32 %v516_v39, %v489_v16 }
 0x14f   : >> { %v518_v42 = vadd.f32 1.0, %v517_v40  ;;  %v522_v43 = vsub.f32 %v487_v18, %v521_v41  ;;  %v524_v44 = vadd.f32 %v521_v41, %v491_v19 }
 0x151   : >> { %1415 = vrsqrt.f32 %v518_v42  ;;  %526 = vst [vmem:[%s525_s16] sm:$0xff] %v522_v43  ;;  %528 = vst [vmem:[%s527_s0] sm:$0xff] %v524_v44  ;;  %s1676_s16 = smov [#allocation25]  ;;  %s1678_s0 = smov [#allocation26] }
 0x15b   : >> { %v1416_v45 = vpop.eup %1415 }
 0x15c   : >> { %530 = vst [vmem:[%s529_s1] sm:$0xff] %v1416_v45  ;;  %v520_v46 = vmul.f32 %v1416_v45, %v516_v39  ;;  %s1680_s1 = smov [#allocation23] }
 0x15e   : >> { %532 = vst [vmem:[%s531_s2] sm:$0xff] %v520_v46  ;;  %s1682_s2 = smov [#allocation18] }
 0x163   : >> { %v534_v47 = vld [vmem:[%s533_s3] ss:$0 sm:$0xff]  ;;  %s1684_s3 = smov [#allocation15] }
 0x164   : >> { %v543_v48 = vsel %vm542_vm12, %v534_v47, 0.0  ;;  %v592_v27 = vld [vmem:[%s591_s13] ss:$0 sm:$0xff]  ;;  %s763_s13 = smov [#allocation24] }
 0x165   : >> { %544 = vadd.xlane.f32.xlu0 %v543_v48  ;;  %v549_v49 = vld [vmem:[%s548_s17] ss:$0 sm:$0xff]  ;;  %s1688_s17 = smov [#allocation20] }
 0x166   : >> { %v558_v50 = vsel %vm557_vm13, %v549_v49, 0.0  ;;  %v594_v28 = vld [vmem:[%s593_s14] ss:$0 sm:$0xff]  ;;  %s740_s14 = smov [#allocation25] }
 0x169   : >> { %559 = vadd.xlane.f32.xlu0 %v558_v50 }
 0x1f2   : >> { %v545_v51 = vpop.xlane.xlu0 %544 }
 0x1f3   : >> { %547 = vst [vmem:[%s546_s18] sm:$0xff] %v545_v51  ;;  %s1690_s18 = smov [#allocation24] }
 0x1f6   : >> { %v560_v52 = vpop.xlane.xlu0 %559 }
 0x1f7   : >> { %562 = vst [vmem:[%s561_s21] sm:$0xff] %v560_v52  ;;  %s660_s21 = smov [#allocation26] }
 0x1fa   : >> { %v564_v60 = vld [vmem:[%s563_s19] sm:$0xff]  ;;  %s661_s19 = smov [#allocation31] }
 0x1fb   : >> { %v788_v62 = vld [vmem:[%s787_s30] sm:$0xff]  ;;  %v575_v63 = vmul.f32 %v571_v53, %v564_v60  ;;  %v578_v0 = vmul.f32 %v572_v54, %v564_v60  ;;  %v582_v1 = vmul.f32 %v573_v55, %v564_v60  ;;  %v585_v2 = vmul.f32 %v574_v56, %v564_v60  ;;  %s676_s30 = smov [#allocation24] }
 0x1fc   : >> { %v799_v3 = vmul.f32 %v795_v57, %v788_v62  ;;  %v802_v4 = vmul.f32 %v796_v58, %v788_v62  ;;  %v806_v7 = vmul.f32 %v797_v59, %v788_v62  ;;  %v809_v8 = vmul.f32 %v798_v61, %v788_v62 }
 0x1fe   : >> { %v566_v9 = vld [vmem:[%s565_s11] sm:$0xff]  ;;  %s1735_s11 = smov [#allocation26] }
 0x1ff   : >> { %v790_v10 = vld [vmem:[%s789_s12] sm:$0xff]  ;;  %v576_v11 = vmul.f32 %v573_v55, %v566_v9  ;;  %v579_v12 = vmul.f32 %v574_v56, %v566_v9  ;;  %v581_v13 = vmul.f32 %v571_v53, %v566_v9  ;;  %v584_v14 = vmul.f32 %v572_v54, %v566_v9  ;;  %s739_s12 = smov [#allocation23] }
 0x200   : >> { %v800_v15 = vmul.f32 %v797_v59, %v790_v10  ;;  %v803_v16 = vmul.f32 %v798_v61, %v790_v10  ;;  %v805_v17 = vmul.f32 %v795_v57, %v790_v10  ;;  %v808_v18 = vmul.f32 %v796_v58, %v790_v10  ;;  %v668_v59 = vld [vmem:[%s661_s19] ss:$0 sm:$0xff] }
 0x201   : >> { %v577_v19 = vsub.f32 %v575_v63, %v576_v11  ;;  %v580_v20 = vsub.f32 %v578_v0, %v579_v12  ;;  %v583_v21 = vadd.f32 %v582_v1, %v581_v13  ;;  %v586_v22 = vadd.f32 %v585_v2, %v584_v14 }
 0x202   : >> { %v801_v23 = vsub.f32 %v799_v3, %v800_v15  ;;  %v804_v24 = vsub.f32 %v802_v4, %v803_v16  ;;  %v807_v25 = vadd.f32 %v806_v7, %v805_v17  ;;  %v810_v26 = vadd.f32 %v809_v8, %v808_v18 }
 0x203   : >> { %588 = vst [vmem:[%s1644_s22] sm:$0x3] %v580_v20  ;;  %590 = vst [vmem:[%s1648_s24] sm:$0x3] %v586_v22  ;;  %s620_s22 = smov [#allocation30]  ;;  %s634_s24 = smov [#allocation24] }
 0x204   : >> { %587 = vst [vmem:[%s1642_s20] sm:$0x3] %v577_v19  ;;  %589 = vst [vmem:[%s1646_s23] sm:$0x3] %v583_v21  ;;  %s647_s20 = smov [#allocation25]  ;;  %s619_s23 = smov [#allocation23]  ;;  %v627_v63 = vld [vmem:[%s620_s22] ss:$0 sm:$0xff] }
 0x205   : >> { %811 = vst [vmem:[%s1650_s25] sm:$0x3] %v801_v23  ;;  %812 = vst [vmem:[%s1652_s28] sm:$0x3] %v804_v24  ;;  %s1732_s25 = smov [#allocation25]  ;;  %s1528_s28 = smov 1  }
 0x206   : >> { %813 = vst [vmem:[%s1654_s29] sm:$0x3] %v807_v25  ;;  %814 = vst [vmem:[%s1658_s10] sm:$0x3] %v810_v26  ;;  %s675_s29 = smov [#allocation23]  ;;  %s1529_s10 = smov 127  }
 0x20a   : >> { %v602_v30 = vld [vmem:[%s1678_s0] sm:$0x3] }
 0x20b   : >> { %v601_v29 = vld [vmem:[%s1676_s16] sm:$0x3]  ;;  %v610_v36 = vmul.f32 %v602_v30, %v594_v28  ;;  %v613_v42 = vmul.f32 %v602_v30, %v592_v27 }
 0x20c   : >> { %v599_v31 = vld [vmem:[%s1680_s1] sm:$0x3]  ;;  %v609_v35 = vmul.f32 %v601_v29, %v592_v27  ;;  %v612_v37 = vmul.f32 %v601_v29, %v594_v28 }
 0x20d   : >> { %v817_v32 = vld [vmem:[%s1674_s15] ss:$0 sm:$0xff]  ;;  %v1365_v34 = vld [vmem:[%s1674_s15 + $0x1] ss:$0 sm:$0xff]  ;;  %v603_v48 = vmul.f32 %v599_v31, %v592_v27  ;;  %v606_v49 = vmul.f32 %v599_v31, %v594_v28 }
 0x20e   : >> { %v1364_v33 = vld [vmem:[%s1674_s15 - $0x1] sm:$0x2]  ;;  %v1367_v40 = vld [vmem:[%s1682_s2 + $0x1] sm:$0x1]  ;;  %v611_v47 = vsub.f32 %v609_v35, %v610_v36  ;;  %v614_v53 = vadd.f32 %v613_v42, %v612_v37 }
 0x20f   : >> { %v824_v38 = vsel %vm747_vm14, %v817_v32, %v1364_v33  ;;  %v828_v39 = vld [vmem:[%s1682_s2] ss:$0 sm:$0xff]  ;;  %v836_v43 = vsel %vm759_vm15, %v1365_v34, %v1367_v40  ;;  %v1369_v45 = vld [vmem:[%s1684_s3 + $0x1] ss:$0 sm:$0xff] }
 0x210   : >> { %v841_v41 = vld [vmem:[%s1684_s3] ss:$0 sm:$0xff]  ;;  %827 = vst [vmem:[%s1674_s15] sm:$0x3] %v824_v38  ;;  %838 = vst [vmem:[%s1682_s2] sm:$0x3] %v836_v43  ;;  %v1371_v51 = vld [vmem:[%s1688_s17 + $0x1] sm:$0x1] }
 0x211   : >> { %v1368_v44 = vld [vmem:[%s1684_s3 - $0x1] sm:$0x2]  ;;  %1366 = vst [vmem:[%s1674_s15 + $0x1] sm:$0x1] %v828_v39  ;;  %v860_v54 = vsel %vm759_vm15, %v1369_v45, %v1371_v51  ;;  %617 = vst [vmem:[%s1676_s16] sm:$0x3] %v611_v47  ;;  %s764_s15 = smov [#allocation26] }
 0x212   : >> { %v852_v46 = vld [vmem:[%s1688_s17] ss:$0 sm:$0xff]  ;;  %v848_v50 = vsel %vm747_vm14, %v841_v41, %v1368_v44  ;;  %618 = vst [vmem:[%s1678_s0] sm:$0x3] %v614_v53  ;;  %s863_s16 = sadd.s32 (%p420_p1), 1, %s1521_s26   ;;  %s328_s0 = smov (%p420_p1), [#allocation23] }
 0x213   : >> { %v600_v52 = vld [vmem:[%s1690_s18] sm:$0x3]  ;;  %851 = vst [vmem:[%s1684_s3] sm:$0x3] %v848_v50  ;;  %862 = vst [vmem:[%s1688_s17] sm:$0x3] %v860_v54  ;;  %s364_s2 = smov (%p420_p1), [#allocation25]  ;;  %p416_p2 = scmp.ge.s32.totalorder (%p420_p1), %s863_s16, 15 }
 0x214   : >> { %v604_v55 = vmul.f32 %v600_v52, %v594_v28  ;;  %v607_v56 = vmul.f32 %v600_v52, %v592_v27  ;;  %1370 = vst [vmem:[%s1684_s3 + $0x1] sm:$0x1] %v852_v46  ;;  %s381_s3 = smov (%p420_p1), [#allocation26]  ;;  %s1860_s26 = smov (%p420_p1), %s863_s16 }
 0x216   : >> { %v605_v57 = vsub.f32 %v603_v48, %v604_v55  ;;  %v608_v58 = vadd.f32 %v607_v56, %v606_v49 }
 0x218   : >> { %615 = vst [vmem:[%s1680_s1] sm:$0x3] %v605_v57  ;;  %616 = vst [vmem:[%s1690_s18] sm:$0x3] %v608_v58  ;;  %v654_v60 = vld [vmem:[%s647_s20] sm:$0x3]  ;;  %s347_s1 = smov (%p420_p1), [#allocation24] }
 0x219   : >> { %v658_v61 = vsel %vm657_vm0, 0.0, %v654_v60  ;;  %v669_v62 = vld [vmem:[%s660_s21] sm:$0x3] }
 0x21a   : >> { %659 = vst [vmem:[%s647_s20] sm:$0x3] %v658_v61  ;;  %v673_v0 = vsel %vm672_vm1, %v668_v59, %v669_v62 }
 0x21b   : >> { %674 = vst [vmem:[%s660_s21] sm:$0x3] %v673_v0 }
 0x21f   : >> { %v628_v1 = vld [vmem:[%s619_s23] sm:$0x3] }
 0x220   : >> { %v641_v2 = vld [vmem:[%s634_s24] sm:$0x3]  ;;  %v632_v3 = vsel %vm631_vm3, %v627_v63, %v628_v1 }
 0x221   : >> { %v645_v4 = vsel %vm644_vm4, 0.0, %v641_v2  ;;  %633 = vst [vmem:[%s619_s23] sm:$0x3] %v632_v3  ;;  %v713_v7 = vld [vmem:[%s1732_s25] sm:$0x3] }
 0x222   : >> { %646 = vst [vmem:[%s634_s24] sm:$0x3] %v645_v4  ;;  %714 = vrot.lane.b32.xlu0 %v713_v7, %s1528_s28  ;;  %v709_v11 = vld [vmem:[%s1735_s11] sm:$0x3] }
 0x223   : >> { %v730_v12 = vld [vmem:[%s1735_s11] sm:$0x3] }
 0x224   : >> { %v712_v30 = vld [vmem:[%s1732_s25] sm:$0x3] }
 0x228   : >> { %v681_v8 = vld [vmem:[%s675_s29] sm:$0x3] }
 0x229   : >> { %682 = vrot.lane.b32.xlu1 %v681_v8, %s1528_s28  ;;  %v677_v9 = vld [vmem:[%s676_s30] sm:$0x3] }
 0x22a   : >> { %v698_v10 = vld [vmem:[%s676_s30] sm:$0x3] }
 0x22b   : >> { %v680_v18 = vld [vmem:[%s675_s29] sm:$0x3] }
 0x22d   : >> { %678 = vrot.lane.b32.xlu1 %v677_v9, %s1528_s28 }
 0x231   : >> { %699 = vrot.lane.b32.xlu1 %v698_v10, %s1529_s10 }
 0x235   : >> { %710 = vrot.lane.b32.xlu1 %v709_v11, %s1528_s28 }
 0x239   : >> { %731 = vrot.lane.b32.xlu1 %v730_v12, %s1529_s10 }
 0x294   : >> { %v715_v20 = vpop.permute.xlu0 %714 }
 0x295   : >> { %v719_v22 = vsel %vm686_vm5, %v713_v7, %v715_v20 }
 0x29b   : >> { %v683_v13 = vpop.permute.xlu1 %682 }
 0x29c   : >> { %v687_v14 = vsel %vm686_vm5, %v681_v8, %v683_v13 }
 0x29f   : >> { %v679_v15 = vpop.permute.xlu1 %678 }
 0x2a0   : >> { %v691_v16 = vsel %vm690_vm6, %v679_v15, %v687_v14 }
 0x2a1   : >> { %v697_v17 = vsel %vm1223_vm2, %v691_v16, 0.0 }
 0x2a2   : >> { %705 = vst [vmem:[%s675_s29] sm:$0x3] %v697_v17 }
 0x2a3   : >> { %v700_v19 = vpop.permute.xlu1 %699 }
 0x2a4   : >> { %v704_v21 = vsel %vm690_vm6, %v680_v18, %v700_v19 }
 0x2a5   : >> { %706 = vst [vmem:[%s676_s30] sm:$0x3] %v704_v21 }
 0x2a7   : >> { %v711_v23 = vpop.permute.xlu1 %710 }
 0x2a8   : >> { %v723_v24 = vsel %vm690_vm6, %v711_v23, %v719_v22 }
 0x2a9   : >> { %v741_v25 = vld [vmem:[%s739_s12] ss:$0 sm:$0xff]  ;;  %v1357_v27 = vld [vmem:[%s739_s12 + $0x1] ss:$0 sm:$0xff]  ;;  %v729_v29 = vsel %vm1223_vm2, %v723_v24, 0.0 }
 0x2aa   : >> { %v1356_v26 = vld [vmem:[%s739_s12 - $0x1] sm:$0x2]  ;;  %737 = vst [vmem:[%s1732_s25] sm:$0x3] %v729_v29 }
 0x2ab   : >> { %v748_v28 = vsel %vm747_vm14, %v741_v25, %v1356_v26  ;;  %v732_v31 = vpop.permute.xlu1 %731 }
 0x2ac   : >> { %751 = vst [vmem:[%s739_s12] sm:$0x3] %v748_v28  ;;  %v765_v32 = vld [vmem:[%s763_s13] ss:$0 sm:$0xff]  ;;  %v1361_v34 = vld [vmem:[%s763_s13 + $0x1] ss:$0 sm:$0xff]  ;;  %v736_v35 = vsel %vm690_vm6, %v712_v30, %v732_v31 }
 0x2ad   : >> { %v1360_v33 = vld [vmem:[%s763_s13 - $0x1] sm:$0x2]  ;;  %738 = vst [vmem:[%s1735_s11] sm:$0x3] %v736_v35 }
 0x2ae   : >> { %v772_v36 = vsel %vm747_vm14, %v765_v32, %v1360_v33 }
 0x2af   : >> { %775 = vst [vmem:[%s763_s13] sm:$0x3] %v772_v36 }
 0x2b1   : >> { %v752_v37 = vld [vmem:[%s740_s14] ss:$0 sm:$0xff]  ;;  %v1359_v38 = vld [vmem:[%s740_s14 + $0x1] sm:$0x1] }
 0x2b2   : >> { %1358 = vst [vmem:[%s739_s12 + $0x1] sm:$0x1] %v752_v37  ;;  %v760_v39 = vsel %vm759_vm15, %v1357_v27, %v1359_v38  ;;  %422 = sbr.rel (!%p420_p1) target bundleno = 258 (0x102), region = 319 }
 0x2b3   : >> { %762 = vst [vmem:[%s740_s14] sm:$0x3] %v760_v39 }
 0x2b4   : >> { %v776_v40 = vld [vmem:[%s764_s15] ss:$0 sm:$0xff]  ;;  %v1363_v41 = vld [vmem:[%s764_s15 + $0x1] sm:$0x1] }
 0x2b5   : >> { %1362 = vst [vmem:[%s763_s13 + $0x1] sm:$0x1] %v776_v40  ;;  %v784_v42 = vsel %vm759_vm15, %v1361_v34, %v1363_v41 }
 0x2b6   : >> { %786 = vst [vmem:[%s764_s15] sm:$0x3] %v784_v42 }
 0x2b9   : > { %v334_v43 = vld [vmem:[%s328_s0] sm:$0x3] }
 0x2ba   : > { %v335_v45 = vsel %vm1223_vm2, %v334_v43, 0.0  ;;  %v370_v47 = vld [vmem:[%s364_s2] sm:$0x3] }
 0x2bb   : > { %v336_v49 = vmul.f32 %v335_v45, %v335_v45  ;;  %v371_v51 = vsel %vm1223_vm2, %v370_v47, 0.0 }
 0x2bc   : > { %v353_v44 = vld [vmem:[%s347_s1] sm:$0x3]  ;;  %v372_v53 = vmul.f32 %v371_v51, %v371_v51 }
 0x2bd   : > { %v354_v46 = vsel %vm1223_vm2, %v353_v44, 0.0  ;;  %v387_v48 = vld [vmem:[%s381_s3] sm:$0x3]  ;;  %v340_v56 = vsel %vm339_vm7, 0.0, %v336_v49 }
 0x2be   : > { %v355_v50 = vmul.f32 %v354_v46, %v354_v46  ;;  %v388_v52 = vsel %vm1223_vm2, %v387_v48, 0.0 }
 0x2bf   : > { %v389_v55 = vmul.f32 %v388_v52, %v388_v52 }
 0x2c0   : > { %v357_v54 = vadd.f32 %v355_v50, %v336_v49  ;;  %v356_v57 = vadd.f32 %v355_v50, %v340_v56 }
 0x2c1   : > { %v393_v60 = vsel %vm392_vm8, 0.0, %v389_v55 }
 0x2c2   : > { %v374_v58 = vadd.f32 %v372_v53, %v357_v54  ;;  %v373_v59 = vadd.f32 %v372_v53, %v356_v57 }
 0x2c4   : > { %v395_v61 = vadd.f32 %v389_v55, %v374_v58  ;;  %v394_v62 = vadd.f32 %v393_v60, %v373_v59 }
 0x2c6   : > { %396 = vadd.xlane.f32.xlu0 %v395_v61 }
 0x2ca   : > { %404 = vadd.xlane.f32.xlu0 %v394_v62 }
 0x353   : > { %v397_v63 = vpop.xlane.xlu0 %396 }
 0x354   : > { %v398_v0 = vrot.slane %v397_v63, 4 }
 0x356   : > { %v399_v1 = vadd.f32 %v398_v0, %v397_v63 }
 0x357   : > { %v405_v2 = vpop.xlane.xlu0 %404 }
 0x358   : > { %v400_v3 = vrot.slane %v399_v1, 2  ;;  %v406_v4 = vrot.slane %v405_v2, 4 }
 0x35a   : > { %v407_v7 = vadd.f32 %v406_v4, %v405_v2  ;;  %v401_v8 = vadd.f32 %v400_v3, %v399_v1 }
 0x35c   : > { %v408_v9 = vrot.slane %v407_v7, 2  ;;  %v402_v11 = vrot.slane %v401_v8, 1 }
 0x35e   : > { %v409_v10 = vadd.f32 %v408_v9, %v407_v7  ;;  %v403_v14 = vadd.f32 %v402_v11, %v401_v8 }
 0x360   : > { %v410_v12 = vrot.slane %v409_v10, 1 }
 0x362   : > { %v411_v13 = vadd.f32 %v410_v12, %v409_v10 }
 0x364   : > { %1382 = vpush %v411_v13 }
 0x365   : > { %1384 = vpush %v403_v14 }
 0x395   : > { %s1383_s27 = spop %1382 }
 0x396   : > { %s1385_s17 = spop %1384 }
 0x397   : > { %s414_s18 = smul.f32 1e-10, %s1385_s17 }
 0x399   : > { %p415_p3 = scmp.le.f32.partialorder %s1383_s27, %s414_s18 }
 0x39b   : > { %p417_p4 = por %p416_p2, %p415_p3 }
 0x39d   :  { %865 = sbr.rel (!%p417_p4) target bundleno = 257 (0x101), region = 330 }
 0x3a4 PF:  { %v927_v15 = vld [vmem:[#allocation15] sm:$0x3]  ;;  %s866_s19 = smov [#allocation23]  ;;  %v870_v5 = vmov %v1596_v5  ;;  %v873_v6 = vmov %v1598_v6  ;;  %v921_v16 = vld [vmem:[#allocation12] sm:$0x3]  ;;  %s1530_s20 = smov [#allocation16]  }
 0x3a5   :  { %v890_v5 = vmov %v1596_v5  ;;  %v893_v6 = vmov %v1598_v6  ;;  %929 = vst [vmem:[#allocation16] sm:$0x3] %v927_v15  ;;  %s1080_s21 = sshll.u32 %s1530_s20, 4  ;;  %v874_v17 = vld [vmem:[%s866_s19] sm:$0x3]  ;;  %vm877_vm9 = vcmp.eq.s32.totalorder %v873_v6, %v870_v5  ;;  %s886_s26 = smov [#allocation26]  ;;  %s1081_s21 = int_to_ptr.vmem [resolvable:$true] %s1080_s21 }
 0x3a6   :  { %vm897_vm10 = vcmp.eq.s32.totalorder %v893_v6, %v890_v5  ;;  %923 = vst [vmem:[#allocation13] sm:$0x3] %v921_v16  ;;  %v933_v18 = vld [vmem:[#allocation18] sm:$0x3]  ;;  %v878_v19 = vsel %vm877_vm9, %v874_v17, 0.0  ;;  %s1417_s22 = scalar_lea.vmem %s1081_s21, 32  ;;  %p1422_p6 = scmp.lt.s32.totalorder %s1081_s21, %s1081_s21 }
 0x3a7   :  { %935 = vst [vmem:[#allocation19] sm:$0x3] %v933_v18  ;;  %v939_v20 = vld [vmem:[#allocation20] sm:$0x3]  ;;  %p1418_p5 = scmp.ne.s32.totalorder %s1081_s21, %s1417_s22  ;;  %p1423_p7 = scmp.lt.s32.totalorder %s1417_s22, %s1417_s22 }
 0x3a9   :  { %p1424_p8 = por %p1423_p7, %p1422_p6 }
 0x3ab   :  { %p1425_p9 = pnand %p1424_p8, %p1418_p5 }
 0x3ad   :  { %1428 = shalt.err (!%p1425_p9)
}
 0x3ae   :  { %s1429_s25 = scalar_lea.hbm %s1857_s7, 32 }
 0x3af   :  { %p1430_p10 = scmp.ne.s32.totalorder %s1857_s7, %s1429_s25  ;;  %p1433_p11 = scmp.lt.u32.totalorder %s1429_s25, %s1857_s7 }
 0x3b1   :  { %p1435_p12 = pnand %p1433_p11, %p1430_p10 }
 0x3b3   :  { %1438 = shalt.err (!%p1435_p12)
}
 0x3b4   :  { %1083 = dma.vmem_to_hbm [thread:$0]  %s1081_s21, 32, %s1857_s7, [#allocation17]   ;;  %v879_v21 = vrot.slane %v878_v19, 4  ;;  %v894_v22 = vld [vmem:[%s886_s26] sm:$0x3] }
 0x3b5   :  { %941 = vst [vmem:[#allocation21] sm:$0x3] %v939_v20  ;;  %v898_v23 = vsel %vm897_vm10, %v894_v22, 0.0  ;;  %s1531_s13 = smov [#allocation13]   ;;  %s1532_s15 = smov [#allocation19]  }
 0x3b6   :  { %v880_v24 = vadd.f32 %v879_v21, %v878_v19  ;;  %v899_v25 = vrot.slane %v898_v23, 4  ;;  %s1073_s14 = sshll.u32 %s1531_s13, 4  ;;  %s1087_s16 = sshll.u32 %s1532_s15, 4  ;;  %s1074_s14 = int_to_ptr.vmem [resolvable:$true] %s1073_s14  ;;  %s1088_s16 = int_to_ptr.vmem [resolvable:$true] %s1087_s16 }
 0x3b7   :  { %s1439_s0 = scalar_lea.vmem %s1074_s14, 32  ;;  %p1444_p0 = scmp.lt.s32.totalorder %s1074_s14, %s1074_s14 }
 0x3b8   :  { %v881_v26 = vrot.slane %v880_v24, 2  ;;  %v900_v27 = vadd.f32 %v899_v25, %v898_v23  ;;  %p1440_p13 = scmp.ne.s32.totalorder %s1074_s14, %s1439_s0  ;;  %p1445_p1 = scmp.lt.s32.totalorder %s1439_s0, %s1439_s0 }
 0x3ba   :  { %p1446_p2 = por %p1445_p1, %p1444_p0 }
 0x3bc   :  { %p1447_p3 = pnand %p1446_p2, %p1440_p13 }
 0x3be   :  { %1450 = shalt.err (!%p1447_p3)
}
 0x3bf   :  { %s1451_s2 = scalar_lea.hbm %s1856_s6, 32 }
 0x3c0   :  { %p1452_p4 = scmp.ne.s32.totalorder %s1856_s6, %s1451_s2  ;;  %p1455_p5 = scmp.lt.u32.totalorder %s1451_s2, %s1856_s6 }
 0x3c2   :  { %p1457_p6 = pnand %p1455_p5, %p1452_p4 }
 0x3c4   :  { %1460 = shalt.err (!%p1457_p6)
}
 0x3c5   :  { %1076 = dma.vmem_to_hbm [thread:$0]  %s1074_s14, 32, %s1856_s6, [#allocation14]   ;;  %v882_v5 = vadd.f32 %v881_v26, %v880_v24  ;;  %v901_v6 = vrot.slane %v900_v27, 2 }
 0x3c6   :  { %s1461_s21 = scalar_lea.vmem %s1088_s16, 32  ;;  %p1466_p8 = scmp.lt.s32.totalorder %s1088_s16, %s1088_s16 }
 0x3c7   :  { %p1462_p7 = scmp.ne.s32.totalorder %s1088_s16, %s1461_s21  ;;  %p1467_p9 = scmp.lt.s32.totalorder %s1461_s21, %s1461_s21 }
 0x3c9   :  { %p1468_p10 = por %p1467_p9, %p1466_p8 }
 0x3cb   :  { %p1469_p11 = pnand %p1468_p10, %p1462_p7 }
 0x3cd   :  { %1472 = shalt.err (!%p1469_p11)
}
 0x3ce   :  { %s1473_s23 = scalar_lea.hbm %s1858_s8, 32 }
 0x3cf   :  { %p1474_p12 = scmp.ne.s32.totalorder %s1858_s8, %s1473_s23  ;;  %p1477_p13 = scmp.lt.u32.totalorder %s1473_s23, %s1858_s8 }
 0x3d1   :  { %p1479_p0 = pnand %p1477_p13, %p1474_p12 }
 0x3d3   :  { %1482 = shalt.err (!%p1479_p0)
}
 0x3d4   :  { %1090 = dma.vmem_to_hbm [thread:$0]  %s1088_s16, 32, %s1858_s8, [#allocation17]   ;;  %v883_v28 = vrot.slane %v882_v5, 1  ;;  %v902_v29 = vadd.f32 %v901_v6, %v900_v27 }
 0x3d5   :  { %s1533_s10 = smov [#allocation21]   ;;  %s867_s12 = smov [#allocation8] }
 0x3d6   :  { %s1094_s11 = sshll.u32 %s1533_s10, 4  ;;  %s1095_s11 = int_to_ptr.vmem [resolvable:$true] %s1094_s11 }
 0x3d7   :  { %s1483_s13 = scalar_lea.vmem %s1095_s11, 32  ;;  %p1488_p2 = scmp.lt.s32.totalorder %s1095_s11, %s1095_s11 }
 0x3d8   :  { %p1484_p1 = scmp.ne.s32.totalorder %s1095_s11, %s1483_s13  ;;  %p1489_p3 = scmp.lt.s32.totalorder %s1483_s13, %s1483_s13 }
 0x3da   :  { %p1490_p4 = por %p1489_p3, %p1488_p2 }
 0x3dc   :  { %p1491_p5 = pnand %p1490_p4, %p1484_p1 }
 0x3de   :  { %1494 = shalt.err (!%p1491_p5)
}
 0x3df   :  { %s1495_s0 = scalar_lea.hbm %s1859_s9, 32 }
 0x3e0   :  { %p1496_p6 = scmp.ne.s32.totalorder %s1859_s9, %s1495_s0  ;;  %p1499_p7 = scmp.lt.u32.totalorder %s1495_s0, %s1859_s9 }
 0x3e2   :  { %p1501_p8 = pnand %p1499_p7, %p1496_p6 }
 0x3e4   :  { %1504 = shalt.err (!%p1501_p8)
}
 0x3e5   :  { %1097 = dma.vmem_to_hbm [thread:$0]  %s1095_s11, 32, %s1859_s9, [#allocation22]   ;;  %v884_v30 = vadd.f32 %v883_v28, %v882_v5  ;;  %v903_v31 = vrot.slane %v902_v29, 1 }
 0x3e6   :  { %s887_s27 = smov [#allocation10] }
 0x3e7   :  { %885 = vst [vmem:[%s867_s12] sm:$0x1] %v884_v30  ;;  %v904_v32 = vadd.f32 %v903_v31, %v902_v29 }
 0x3e9   :  { %905 = vst [vmem:[%s887_s27] sm:$0x1] %v904_v32 }
 0x3ee   :  { %v909_v33 = vld [vmem:[#allocation8] sm:$0x1] }
 0x3ef   :  { %911 = vst [vmem:[#allocation9] sm:$0x1] %v909_v33 }
 0x3f0   :  { %v915_v34 = vld [vmem:[#allocation10] sm:$0x1] }
 0x3f1   :  { %917 = vst [vmem:[#allocation11] sm:$0x1] %v915_v34 }
 0x3f6   :  { %v1004_v35 = vld [vmem:[#allocation9] sm:$0x1] }
 0x3f7   :  { %1005 = vst [vmem:[%s1854_s4] sm:$0x1] %v1004_v35 }
 0x3f8   :  { %v1068_v36 = vld [vmem:[#allocation11] sm:$0x1] }
 0x3f9   :  { %1069 = vst [vmem:[%s1855_s5] sm:$0x1] %v1068_v36 }
 0x3fa   :  { %1513 = dma.done.wait [#allocation14], 32  }
 0x3fb   :  { %1514 = vsyncadd [#allocation14], 4294967264 }
 0x3fc   :  { %1515 = dma.done.wait [#allocation17], 64  }
 0x3fd   :  { %1516 = vsyncadd [#allocation17], 4294967232 }
 0x3fe   :  { %1517 = dma.done.wait [#allocation22], 32  }
 0x3ff   :  { %1518 = vsyncadd [#allocation22], 4294967264 }
 0x400   :  { %1106 = vsyncpa [#allocation14], 1 }
 0x401   :  { %1107 = vsyncpa [#allocation17], 1 }
 0x402   :  { %1108 = vsyncpa [#allocation22], 1 }

// kernel: reverse.2
= control target key start
LH: loop header
LB: loop body
LE: loop exit
PB: predicated region body
PF: predicated region fallthrough
CT: control target
= control target key end

     0   :  { %v2_v0 = vlaneseq  ;;  %s123_s0 = inlined_call_operand.vmem [shape: f32[4], index: 0, kind: input, shape index: {}]   ;;  %s124_s1 = inlined_call_operand.vmem [shape: f32[4], index: 1, kind: output, shape index: {}]  }
   0x2   :  { %v3_v1 = vsub.s32 3, %v2_v0 }
   0x4   :  { %4 = vset.pattern.permute.xlu0 %v3_v1 }
   0x5   :  { %v43_v2 = vld [vmem:[#allocation1] sm:$0x1]  ;;  %v21_v3 = vld [vmem:[%s123_s0] sm:$0x1]  ;;  %v58_v10 = vshrl.u32 %v2_v0, 7 }
   0x6   :  { %44 = vst [vmem:[#allocation0] sm:$0x1] %v43_v2  ;;  %22 = vst [vmem:[#allocation1 + $0x1] sm:$0x1] %v21_v3 }
   0x7   :  { %vm59_vm0 = vcmp.lt.s32.totalorder %v58_v10, 1 }
   0xd   :  { %v46_v4 = vld [vmem:[#allocation0 + $0x7] ss:$-1 sm:$0xff]  ;;  %v40_v5 = vld [vmem:[#allocation1 + $0x1] sm:$0x1] }
   0xe   :  { %v47_v6 = vrot.slane %v46_v4, 7  ;;  %42 = vst [vmem:[#allocation0 + $0x8] sm:$0x1] %v40_v5 }
  0x10   :  { %48 = vperm.xlu0 %4, %v47_v6  }
  0x15   :  { %v53_v7 = vld [vmem:[#allocation0 + $0xf] ss:$-1 sm:$0xff] }
  0x16   :  { %v54_v8 = vrot.slane %v53_v7, 7 }
  0x18   :  { %55 = vperm.xlu0 %4, %v54_v8  }
  0x8f   :  { %v49_v9 = vpop.permute.xlu0 %48 }
  0x90   :  { %50 = vst [vmem:[#allocation2] sm:$0xff] %v49_v9 }
  0x97   :  { %v56_v11 = vpop.permute.xlu0 %55 }
  0x98   :  { %60 = vst.msk [vmem:[#allocation2] sm:$0xff] %vm59_vm0, %v56_v11 }
  0x9f   :  { %v64_v12 = vld [vmem:[#allocation2] sm:$0x1] }
  0xa0   :  { %66 = vst [vmem:[#allocation3] sm:$0x1] %v64_v12 }
  0xa7   :  { %v82_v13 = vld [vmem:[#allocation3] sm:$0x1] }
  0xa8   :  { %83 = vst [vmem:[%s124_s1] sm:$0x1] %v82_v13 }

// kernel: daln_forward.1
= control target key start
LH: loop header
LB: loop body
LE: loop exit
PB: predicated region body
PF: predicated region fallthrough
CT: control target
= control target key end

     0   :  { %s1796_s0 = inlined_call_operand.vmem [shape: f32[8,1024], index: 0, kind: input, shape index: {}]   ;;  %s1797_s1 = inlined_call_operand.vmem [shape: f32[1024,32], index: 1, kind: input, shape index: {}]   ;;  %s1798_s2 = inlined_call_operand.vmem [shape: f32[1,32], index: 2, kind: input, shape index: {}]   ;;  %s1799_s3 = inlined_call_operand.vmem [shape: f32[32,32], index: 3, kind: input, shape index: {}]   ;;  %s1800_s4 = inlined_call_operand.vmem [shape: f32[1,32], index: 4, kind: input, shape index: {}]   ;;  %s1801_s5 = inlined_call_operand.vmem [shape: f32[32,128], index: 5, kind: input, shape index: {}]   ;;  %s1802_s6 = inlined_call_operand.vmem [shape: f32[1,128], index: 6, kind: input, shape index: {}]   ;;  %s1803_s7 = inlined_call_operand.vmem [shape: f32[8,128], index: 7, kind: input, shape index: {}]   ;;  %s1804_s8 = inlined_call_operand.vmem [shape: f32[8,128], index: 8, kind: output, shape index: {0}]   ;;  %s1805_s9 = inlined_call_operand.hbm [shape: f32[1,1], index: 9, kind: output, shape index: {1}]  }
   0x1   :  { %v62_v0 = vld [vmem:[%s1797_s1 + $0x80] sm:$0xff]  ;;  %v63_v1 = vld [vmem:[%s1797_s1 + $0x88] sm:$0xff]  ;;  %v64_v11 = vld [vmem:[%s1797_s1 + $0x90] sm:$0xff] }
   0x2   :  { %v46_v2 = vld [vmem:[%s1797_s1] sm:$0xff]  ;;  %v1073_v3 = vpack.c.bf16 %v63_v1, %v62_v0  ;;  %v47_v4 = vld [vmem:[%s1797_s1 + $0x8] sm:$0xff]  ;;  %v65_v13 = vld [vmem:[%s1797_s1 + $0x98] sm:$0xff] }
   0x3   :  { %v94_v5 = vld [vmem:[%s1797_s1 + $0x180] sm:$0xff]  ;;  %v95_v6 = vld [vmem:[%s1797_s1 + $0x188] sm:$0xff]  ;;  %v1075_v7 = vpack.c.bf16 %v47_v4, %v46_v2  ;;  %v48_v14 = vld [vmem:[%s1797_s1 + $0x10] sm:$0xff]  ;;  %v1077_v16 = vpack.c.bf16 %v65_v13, %v64_v11 }
   0x4   :  { %v1105_v8 = vpack.c.bf16 %v95_v6, %v94_v5  ;;  %v78_v9 = vld [vmem:[%s1797_s1 + $0x100] sm:$0xff]  ;;  %v79_v10 = vld [vmem:[%s1797_s1 + $0x108] sm:$0xff]  ;;  %1074 = vmatprep.subr.bf16.mxu0 %v1073_v3  ;;  %v49_v15 = vld [vmem:[%s1797_s1 + $0x18] sm:$0xff] }
   0x5   :  { %v1107_v12 = vpack.c.bf16 %v79_v10, %v78_v9  ;;  %1076 = vmatpush3.bf16.msra.mxu0 %v1075_v7  ;;  %v1079_v17 = vpack.c.bf16 %v49_v15, %v48_v14  ;;  %v96_v18 = vld [vmem:[%s1797_s1 + $0x190] sm:$0xff]  ;;  %v97_v19 = vld [vmem:[%s1797_s1 + $0x198] sm:$0xff]  ;;  %v66_v23 = vld [vmem:[%s1797_s1 + $0xa0] sm:$0xff] }
   0x6   :  { %1106 = vmatprep.subr.bf16.mxu1 %v1105_v8  ;;  %v80_v20 = vld [vmem:[%s1797_s1 + $0x110] sm:$0xff]  ;;  %v1109_v21 = vpack.c.bf16 %v97_v19, %v96_v18  ;;  %v81_v22 = vld [vmem:[%s1797_s1 + $0x118] sm:$0xff]  ;;  %v67_v24 = vld [vmem:[%s1797_s1 + $0xa8] sm:$0xff]  ;;  %1078 = vmatprep.subr.bf16.mxu0 %v1077_v16 }
   0x7   :  { %1108 = vmatpush3.bf16.msra.mxu1 %v1107_v12  ;;  %v1111_v25 = vpack.c.bf16 %v81_v22, %v80_v20  ;;  %v1081_v26 = vpack.c.bf16 %v67_v24, %v66_v23  ;;  %v50_v27 = vld [vmem:[%s1797_s1 + $0x20] sm:$0xff]  ;;  %v51_v28 = vld [vmem:[%s1797_s1 + $0x28] sm:$0xff]  ;;  %v68_v35 = vld [vmem:[%s1797_s1 + $0xb0] sm:$0xff] }
   0x8   :  { %v98_v29 = vld [vmem:[%s1797_s1 + $0x1a0] sm:$0xff]  ;;  %1110 = vmatprep.subr.bf16.mxu1 %v1109_v21  ;;  %v99_v30 = vld [vmem:[%s1797_s1 + $0x1a8] sm:$0xff]  ;;  %v1083_v33 = vpack.c.bf16 %v51_v28, %v50_v27  ;;  %v69_v36 = vld [vmem:[%s1797_s1 + $0xb8] sm:$0xff] }
   0x9   :  { %v82_v31 = vld [vmem:[%s1797_s1 + $0x120] sm:$0xff]  ;;  %v83_v32 = vld [vmem:[%s1797_s1 + $0x128] sm:$0xff]  ;;  %1080 = vmatpush3.bf16.msra.mxu0 %v1079_v17  ;;  %v1113_v34 = vpack.c.bf16 %v99_v30, %v98_v29  ;;  %v52_v37 = vld [vmem:[%s1797_s1 + $0x30] sm:$0xff]  ;;  %v1085_v39 = vpack.c.bf16 %v69_v36, %v68_v35 }
   0xa   :  { %1082 = vmatprep.subr.bf16.mxu0 %v1081_v26  ;;  %v1115_v38 = vpack.c.bf16 %v83_v32, %v82_v31  ;;  %v53_v40 = vld [vmem:[%s1797_s1 + $0x38] sm:$0xff]  ;;  %v100_v41 = vld [vmem:[%s1797_s1 + $0x1b0] sm:$0xff]  ;;  %v70_v46 = vld [vmem:[%s1797_s1 + $0xc0] sm:$0xff] }
   0xb   :  { %1112 = vmatpush3.bf16.msra.mxu1 %v1111_v25  ;;  %v101_v42 = vld [vmem:[%s1797_s1 + $0x1b8] sm:$0xff]  ;;  %v84_v44 = vld [vmem:[%s1797_s1 + $0x130] sm:$0xff]  ;;  %v71_v47 = vld [vmem:[%s1797_s1 + $0xc8] sm:$0xff]  ;;  %v1087_v48 = vpack.c.bf16 %v53_v40, %v52_v37 }
   0xc   :  { %1114 = vmatprep.subr.bf16.mxu1 %v1113_v34  ;;  %v1117_v43 = vpack.c.bf16 %v101_v42, %v100_v41  ;;  %v85_v45 = vld [vmem:[%s1797_s1 + $0x138] sm:$0xff]  ;;  %v102_v49 = vld [vmem:[%s1797_s1 + $0x1c0] sm:$0xff]  ;;  %v103_v50 = vld [vmem:[%s1797_s1 + $0x1c8] sm:$0xff]  ;;  %v1089_v52 = vpack.c.bf16 %v71_v47, %v70_v46 }
   0xd   :  { %1084 = vmatpush3.bf16.msra.mxu0 %v1083_v33  ;;  %v1119_v51 = vpack.c.bf16 %v85_v45, %v84_v44  ;;  %v54_v53 = vld [vmem:[%s1797_s1 + $0x40] sm:$0xff]  ;;  %v55_v54 = vld [vmem:[%s1797_s1 + $0x48] sm:$0xff]  ;;  %v1121_v56 = vpack.c.bf16 %v103_v50, %v102_v49  ;;  %v72_v58 = vld [vmem:[%s1797_s1 + $0xd0] sm:$0xff] }
   0xe   :  { %1086 = vmatprep.subr.bf16.mxu0 %v1085_v39  ;;  %v86_v55 = vld [vmem:[%s1797_s1 + $0x140] sm:$0xff]  ;;  %v87_v57 = vld [vmem:[%s1797_s1 + $0x148] sm:$0xff]  ;;  %v73_v59 = vld [vmem:[%s1797_s1 + $0xd8] sm:$0xff]  ;;  %v1091_v62 = vpack.c.bf16 %v55_v54, %v54_v53 }
   0xf   :  { %1116 = vmatpush3.bf16.msra.mxu1 %v1115_v38  ;;  %v104_v60 = vld [vmem:[%s1797_s1 + $0x1d0] sm:$0xff]  ;;  %v105_v61 = vld [vmem:[%s1797_s1 + $0x1d8] sm:$0xff]  ;;  %v1123_v63 = vpack.c.bf16 %v87_v57, %v86_v55  ;;  %v1093_v0 = vpack.c.bf16 %v73_v59, %v72_v58  ;;  %v74_v6 = vld [vmem:[%s1797_s1 + $0xe0] sm:$0xff] }
  0x10   :  { %1118 = vmatprep.subr.bf16.mxu1 %v1117_v43  ;;  %v56_v1 = vld [vmem:[%s1797_s1 + $0x50] sm:$0xff]  ;;  %v57_v2 = vld [vmem:[%s1797_s1 + $0x58] sm:$0xff]  ;;  %v1125_v4 = vpack.c.bf16 %v105_v61, %v104_v60  ;;  %v75_v7 = vld [vmem:[%s1797_s1 + $0xe8] sm:$0xff] }
  0x11   :  { %1088 = vmatpush3.bf16.msra.mxu0 %v1087_v48  ;;  %v88_v3 = vld [vmem:[%s1797_s1 + $0x150] sm:$0xff]  ;;  %v89_v5 = vld [vmem:[%s1797_s1 + $0x158] sm:$0xff]  ;;  %v106_v8 = vld [vmem:[%s1797_s1 + $0x1e0] sm:$0xff]  ;;  %v1095_v10 = vpack.c.bf16 %v57_v2, %v56_v1  ;;  %v1097_v14 = vpack.c.bf16 %v75_v7, %v74_v6 }
  0x12   :  { %1090 = vmatprep.subr.bf16.mxu0 %v1089_v52  ;;  %v107_v9 = vld [vmem:[%s1797_s1 + $0x1e8] sm:$0xff]  ;;  %v58_v11 = vld [vmem:[%s1797_s1 + $0x60] sm:$0xff]  ;;  %v1127_v13 = vpack.c.bf16 %v89_v5, %v88_v3  ;;  %v76_v19 = vld [vmem:[%s1797_s1 + $0xf0] sm:$0xff] }
  0x13   :  { %1120 = vmatpush3.bf16.msra.mxu1 %v1119_v51  ;;  %v59_v12 = vld [vmem:[%s1797_s1 + $0x68] sm:$0xff]  ;;  %v90_v15 = vld [vmem:[%s1797_s1 + $0x160] sm:$0xff]  ;;  %v1129_v18 = vpack.c.bf16 %v107_v9, %v106_v8  ;;  %v77_v20 = vld [vmem:[%s1797_s1 + $0xf8] sm:$0xff] }
  0x14   :  { %1122 = vmatprep.subr.bf16.mxu1 %v1121_v56  ;;  %v91_v16 = vld [vmem:[%s1797_s1 + $0x168] sm:$0xff]  ;;  %v35_v21 = vld [vmem:[%s1796_s0 + $0x18] sm:$0xff]  ;;  %v108_v22 = vld [vmem:[%s1797_s1 + $0x1f0] sm:$0xff]  ;;  %v1099_v24 = vpack.c.bf16 %v59_v12, %v58_v11  ;;  %v1101_v26 = vpack.c.bf16 %v77_v20, %v76_v19 }
  0x15   :  { %1092 = vmatpush3.bf16.msra.mxu0 %v1091_v62  ;;  %v33_v17 = vld [vmem:[%s1796_s0 + $0x8] sm:$0xff]  ;;  %v109_v23 = vld [vmem:[%s1797_s1 + $0x1f8] sm:$0xff]  ;;  %315 = vmatprep.mubr.f32.mxu1 %v35_v21  ;;  %v1131_v25 = vpack.c.bf16 %v91_v16, %v90_v15  ;;  %v60_v27 = vld [vmem:[%s1797_s1 + $0x70] sm:$0xff] }
  0x16   :  { %1094 = vmatprep.subr.bf16.mxu0 %v1093_v0  ;;  %245 = vmatprep.mubr.f32.mxu0 %v33_v17  ;;  %v61_v28 = vld [vmem:[%s1797_s1 + $0x78] sm:$0xff]  ;;  %v92_v29 = vld [vmem:[%s1797_s1 + $0x170] sm:$0xff]  ;;  %v1133_v30 = vpack.c.bf16 %v109_v23, %v108_v22  ;;  %v126_v32 = vld [vmem:[%s1797_s1 + $0x280] sm:$0xff] }
  0x17   :  { %1124 = vmatpush3.bf16.msra.mxu1 %v1123_v63  ;;  %v93_v31 = vld [vmem:[%s1797_s1 + $0x178] sm:$0xff]  ;;  %v127_v33 = vld [vmem:[%s1797_s1 + $0x288] sm:$0xff]  ;;  %v158_v34 = vld [vmem:[%s1797_s1 + $0x380] sm:$0xff]  ;;  %v1103_v36 = vpack.c.bf16 %v61_v28, %v60_v27 }
  0x18   :  { %1126 = vmatprep.subr.bf16.mxu1 %v1125_v4  ;;  %v159_v35 = vld [vmem:[%s1797_s1 + $0x388] sm:$0xff]  ;;  %v1135_v37 = vpack.c.bf16 %v93_v31, %v92_v29  ;;  %v1137_v38 = vpack.c.bf16 %v127_v33, %v126_v32  ;;  %v110_v39 = vld [vmem:[%s1797_s1 + $0x200] sm:$0xff]  ;;  %v128_v44 = vld [vmem:[%s1797_s1 + $0x290] sm:$0xff] }
  0x19   :  { %1096 = vmatpush3.bf16.msra.mxu0 %v1095_v10  ;;  %v111_v40 = vld [vmem:[%s1797_s1 + $0x208] sm:$0xff]  ;;  %v142_v41 = vld [vmem:[%s1797_s1 + $0x300] sm:$0xff]  ;;  %v1169_v42 = vpack.c.bf16 %v159_v35, %v158_v34  ;;  %v129_v45 = vld [vmem:[%s1797_s1 + $0x298] sm:$0xff] }
  0x1a   :  { %1098 = vmatprep.subr.bf16.mxu0 %v1097_v14  ;;  %v143_v43 = vld [vmem:[%s1797_s1 + $0x308] sm:$0xff]  ;;  %v160_v46 = vld [vmem:[%s1797_s1 + $0x390] sm:$0xff]  ;;  %v161_v47 = vld [vmem:[%s1797_s1 + $0x398] sm:$0xff]  ;;  %v1139_v49 = vpack.c.bf16 %v111_v40, %v110_v39  ;;  %v1141_v52 = vpack.c.bf16 %v129_v45, %v128_v44 }
  0x1b   :  { %1128 = vmatpush3.bf16.msra.mxu1 %v1127_v13  ;;  %v32_v48 = vld [vmem:[%s1796_s0] sm:$0xff]  ;;  %v34_v50 = vld [vmem:[%s1796_s0 + $0x10] sm:$0xff]  ;;  %v1171_v51 = vpack.c.bf16 %v143_v43, %v142_v41  ;;  %v113_v54 = vld [vmem:[%s1797_s1 + $0x218] sm:$0xff]  ;;  %v1173_v56 = vpack.c.bf16 %v161_v47, %v160_v46 }
  0x1c   :  { %1130 = vmatprep.subr.bf16.mxu1 %v1129_v18  ;;  %v112_v53 = vld [vmem:[%s1797_s1 + $0x210] sm:$0xff]  ;;  %v145_v57 = vld [vmem:[%s1797_s1 + $0x318] sm:$0xff]  ;;  %v130_v58 = vld [vmem:[%s1797_s1 + $0x2a0] sm:$0xff] }
  0x1d   :  { %1100 = vmatpush3.bf16.msra.mxu0 %v1099_v24  ;;  %v144_v55 = vld [vmem:[%s1797_s1 + $0x310] sm:$0xff]  ;;  %v131_v59 = vld [vmem:[%s1797_s1 + $0x2a8] sm:$0xff]  ;;  %v162_v60 = vld [vmem:[%s1797_s1 + $0x3a0] sm:$0xff]  ;;  %v1143_v62 = vpack.c.bf16 %v113_v54, %v112_v53 }
  0x1e   :  { %1102 = vmatprep.subr.bf16.mxu0 %v1101_v26  ;;  %v163_v61 = vld [vmem:[%s1797_s1 + $0x3a8] sm:$0xff]  ;;  %v1175_v63 = vpack.c.bf16 %v145_v57, %v144_v55  ;;  %v1145_v0 = vpack.c.bf16 %v131_v59, %v130_v58  ;;  %v114_v1 = vld [vmem:[%s1797_s1 + $0x220] sm:$0xff]  ;;  %v132_v6 = vld [vmem:[%s1797_s1 + $0x2b0] sm:$0xff] }
  0x1f   :  { %1132 = vmatpush3.bf16.msra.mxu1 %v1131_v25  ;;  %v115_v2 = vld [vmem:[%s1797_s1 + $0x228] sm:$0xff]  ;;  %v146_v3 = vld [vmem:[%s1797_s1 + $0x320] sm:$0xff]  ;;  %v1177_v4 = vpack.c.bf16 %v163_v61, %v162_v60  ;;  %v133_v7 = vld [vmem:[%s1797_s1 + $0x2b8] sm:$0xff] }
  0x20   :  { %1134 = vmatprep.subr.bf16.mxu1 %v1133_v30  ;;  %v147_v5 = vld [vmem:[%s1797_s1 + $0x328] sm:$0xff]  ;;  %v164_v8 = vld [vmem:[%s1797_s1 + $0x3b0] sm:$0xff]  ;;  %v165_v9 = vld [vmem:[%s1797_s1 + $0x3b8] sm:$0xff]  ;;  %v1147_v10 = vpack.c.bf16 %v115_v2, %v114_v1  ;;  %v1149_v12 = vpack.c.bf16 %v133_v7, %v132_v6 }
  0x21   :  { %1104 = vmatpush3.bf16.msra.mxu0 %v1103_v36  ;;  %v1179_v11 = vpack.c.bf16 %v147_v5, %v146_v3  ;;  %v116_v13 = vld [vmem:[%s1797_s1 + $0x230] sm:$0xff]  ;;  %v117_v14 = vld [vmem:[%s1797_s1 + $0x238] sm:$0xff]  ;;  %v1181_v16 = vpack.c.bf16 %v165_v9, %v164_v8  ;;  %v134_v18 = vld [vmem:[%s1797_s1 + $0x2c0] sm:$0xff] }
  0x22   :  { %1138 = vmatprep.subr.bf16.mxu0 %v1137_v38  ;;  %v148_v15 = vld [vmem:[%s1797_s1 + $0x330] sm:$0xff]  ;;  %v149_v17 = vld [vmem:[%s1797_s1 + $0x338] sm:$0xff]  ;;  %v135_v19 = vld [vmem:[%s1797_s1 + $0x2c8] sm:$0xff]  ;;  %v1151_v22 = vpack.c.bf16 %v117_v14, %v116_v13 }
  0x23   :  { %1136 = vmatpush3.bf16.msra.mxu1 %v1135_v37  ;;  %v166_v20 = vld [vmem:[%s1797_s1 + $0x3c0] sm:$0xff]  ;;  %v167_v21 = vld [vmem:[%s1797_s1 + $0x3c8] sm:$0xff]  ;;  %v39_v25 = vld [vmem:[%s1796_s0 + $0x38] sm:$0xff]  ;;  %v1183_v26 = vpack.c.bf16 %v149_v17, %v148_v15  ;;  %v1153_v27 = vpack.c.bf16 %v135_v19, %v134_v18 }
  0x24   :  { %1170 = vmatprep.subr.bf16.mxu1 %v1169_v42  ;;  %246 = vmatmul.mubr.f32.vlgmr.msra.gmra.mrb[0].mxu0 %v32_v48  ;;  %v118_v23 = vld [vmem:[%s1797_s1 + $0x240] sm:$0xff]  ;;  %v37_v24 = vld [vmem:[%s1796_s0 + $0x28] sm:$0xff] }
  0x25   :  { %1140 = vmatpush3.bf16.msra.mxu0 %v1139_v49  ;;  %v119_v28 = vld [vmem:[%s1797_s1 + $0x248] sm:$0xff]  ;;  %v150_v29 = vld [vmem:[%s1797_s1 + $0x340] sm:$0xff] }
  0x26   :  { %316 = vmatmul.mubr.f32.vlgmr.msra.gmra.mrb[0].mxu1 %v34_v50  ;;  %1142 = vmatprep.subr.bf16.mxu0 %v1141_v52 }
  0x27   :  { %1172 = vmatpush3.bf16.msra.mxu1 %v1171_v51 }
  0x28   :  { %1174 = vmatprep.subr.bf16.mxu1 %v1173_v56 }
  0x29   :  { %1144 = vmatpush3.bf16.msra.mxu0 %v1143_v62 }
  0x2a   :  { %1146 = vmatprep.subr.bf16.mxu0 %v1145_v0 }
  0x2b   :  { %1176 = vmatpush3.bf16.msra.mxu1 %v1175_v63 }
  0x2c   :  { %1178 = vmatprep.subr.bf16.mxu1 %v1177_v4 }
  0x2d   :  { %1148 = vmatpush3.bf16.msra.mxu0 %v1147_v10 }
  0x2e   :  { %1150 = vmatprep.subr.bf16.mxu0 %v1149_v12 }
  0x2f   :  { %1180 = vmatpush3.bf16.msra.mxu1 %v1179_v11 }
  0x30   :  { %15 = vsyncpa [#allocation3], 0  ;;  %1182 = vmatprep.subr.bf16.mxu1 %v1181_v16  ;;  %v1185_v30 = vpack.c.bf16 %v167_v21, %v166_v20  ;;  %v151_v31 = vld [vmem:[%s1797_s1 + $0x348] sm:$0xff]  ;;  %v136_v32 = vld [vmem:[%s1797_s1 + $0x2d0] sm:$0xff]  ;;  %385 = vmatprep.mubr.f32.mxu0 %v37_v24  ;;  %v1155_v36 = vpack.c.bf16 %v119_v28, %v118_v23  ;;  %v1267_v10 = vmov 0.0|0.0   ;;  %vm1268_vm0 = vmmov 0  }
  0x31   :  { %v137_v33 = vld [vmem:[%s1797_s1 + $0x2d8] sm:$0xff]  ;;  %v168_v34 = vld [vmem:[%s1797_s1 + $0x3d0] sm:$0xff]  ;;  %455 = vmatprep.mubr.f32.mxu1 %v39_v25  ;;  %1152 = vmatpush3.bf16.msra.mxu0 %v1151_v22  ;;  %v1187_v37 = vpack.c.bf16 %v151_v31, %v150_v29  ;;  %v138_v44 = vld [vmem:[%s1797_s1 + $0x2e0] sm:$0xff]  ;;  %v1269_v18 = vmov 0.0   ;;  %vm473_vm1 = vcmask 261120   ;;  %vm651_vm6 = vcmask 7168  }
  0x32   :  { %v169_v35 = vld [vmem:[%s1797_s1 + $0x3d8] sm:$0xff]  ;;  %1154 = vmatprep.subr.bf16.mxu0 %v1153_v27  ;;  %v1157_v38 = vpack.c.bf16 %v137_v33, %v136_v32  ;;  %v120_v39 = vld [vmem:[%s1797_s1 + $0x250] sm:$0xff]  ;;  %v139_v45 = vld [vmem:[%s1797_s1 + $0x2e8] sm:$0xff]  ;;  %s1270_s26 = smov [#allocation2]   ;;  %vm665_vm7 = vcmask 0  }
  0x33   :  { %1184 = vmatpush3.bf16.msra.mxu1 %v1183_v26  ;;  %v121_v40 = vld [vmem:[%s1797_s1 + $0x258] sm:$0xff]  ;;  %v152_v41 = vld [vmem:[%s1797_s1 + $0x350] sm:$0xff]  ;;  %v1189_v42 = vpack.c.bf16 %v169_v35, %v168_v34  ;;  %v170_v46 = vld [vmem:[%s1797_s1 + $0x3e0] sm:$0xff]  ;;  %v1161_v50 = vpack.c.bf16 %v139_v45, %v138_v44  ;;  %s852_s27 = sshll.u32 %s1270_s26, 4  ;;  %s853_s27 = int_to_ptr.vmem [resolvable:$true] %s852_s27 }
  0x34   :  { %1186 = vmatprep.subr.bf16.mxu1 %v1185_v30  ;;  %v153_v43 = vld [vmem:[%s1797_s1 + $0x358] sm:$0xff]  ;;  %v171_v47 = vld [vmem:[%s1797_s1 + $0x3e8] sm:$0xff]  ;;  %v1159_v48 = vpack.c.bf16 %v121_v40, %v120_v39  ;;  %v122_v51 = vld [vmem:[%s1797_s1 + $0x260] sm:$0xff]  ;;  %s1243_s29 = scalar_lea.vmem %s853_s27, 16  ;;  %p1248_p1 = scmp.lt.s32.totalorder %s853_s27, %s853_s27 }
  0x35   :  { %1156 = vmatpush3.bf16.msra.mxu0 %v1155_v36  ;;  %v1191_v49 = vpack.c.bf16 %v153_v43, %v152_v41  ;;  %v123_v52 = vld [vmem:[%s1797_s1 + $0x268] sm:$0xff]  ;;  %v154_v53 = vld [vmem:[%s1797_s1 + $0x360] sm:$0xff]  ;;  %v1193_v54 = vpack.c.bf16 %v171_v47, %v170_v46  ;;  %v140_v56 = vld [vmem:[%s1797_s1 + $0x2f0] sm:$0xff]  ;;  %p1244_p0 = scmp.ne.s32.totalorder %s853_s27, %s1243_s29 }
  0x36   :  { %1158 = vmatprep.subr.bf16.mxu0 %v1157_v38  ;;  %v155_v55 = vld [vmem:[%s1797_s1 + $0x368] sm:$0xff]  ;;  %v141_v57 = vld [vmem:[%s1797_s1 + $0x2f8] sm:$0xff]  ;;  %v172_v58 = vld [vmem:[%s1797_s1 + $0x3f0] sm:$0xff]  ;;  %v1163_v60 = vpack.c.bf16 %v123_v52, %v122_v51 }
  0x37   :  { %1188 = vmatpush3.bf16.msra.mxu1 %v1187_v37  ;;  %v173_v59 = vld [vmem:[%s1797_s1 + $0x3f8] sm:$0xff]  ;;  %v1195_v61 = vpack.c.bf16 %v155_v55, %v154_v53  ;;  %v1165_v62 = vpack.c.bf16 %v141_v57, %v140_v56  ;;  %v124_v63 = vld [vmem:[%s1797_s1 + $0x270] sm:$0xff]  ;;  %v36_v6 = vld [vmem:[%s1796_s0 + $0x20] sm:$0xff] }
  0x38   :  { %1190 = vmatprep.subr.bf16.mxu1 %v1189_v42  ;;  %v125_v0 = vld [vmem:[%s1797_s1 + $0x278] sm:$0xff]  ;;  %v1197_v1 = vpack.c.bf16 %v173_v59, %v172_v58  ;;  %v156_v2 = vld [vmem:[%s1797_s1 + $0x370] sm:$0xff]  ;;  %v462_v8 = vld [vmem:[%s1799_s3] sm:$0xff] }
  0x39   :  { %1160 = vmatpush3.bf16.msra.mxu0 %v1159_v48  ;;  %v157_v3 = vld [vmem:[%s1797_s1 + $0x378] sm:$0xff]  ;;  %v1167_v4 = vpack.c.bf16 %v125_v0, %v124_v63  ;;  %v38_v7 = vld [vmem:[%s1796_s0 + $0x30] sm:$0xff]  ;;  %v463_v9 = vld [vmem:[%s1799_s3 + $0x8] sm:$0xff]  ;;  %s1247_s1 = scalar_lea.vmem %s853_s27, 32 }
  0x3a   :  { %1162 = vmatprep.subr.bf16.mxu0 %v1161_v50  ;;  %v1199_v5 = vpack.c.bf16 %v157_v3, %v156_v2  ;;  %v1202_v11 = vpack.c.bf16 %v463_v9, %v462_v8  ;;  %v464_v12 = vld [vmem:[%s1799_s3 + $0x10] sm:$0xff]  ;;  %v465_v13 = vld [vmem:[%s1799_s3 + $0x18] sm:$0xff]  ;;  %v41_v15 = vld [vmem:[%s1801_s5] sm:$0xff]  ;;  %p1249_p2 = scmp.lt.s32.totalorder %s1247_s1, %s1243_s29 }
  0x3b   :  { %1192 = vmatpush3.bf16.msra.mxu1 %v1191_v49  ;;  %v1205_v14 = vpack.c.bf16 %v465_v13, %v464_v12  ;;  %v42_v16 = vld [vmem:[%s1801_s5 + $0x8] sm:$0xff]  ;;  %v43_v19 = vld [vmem:[%s1801_s5 + $0x10] sm:$0xff]  ;;  %v44_v20 = vld [vmem:[%s1801_s5 + $0x18] sm:$0xff] }
  0x3c   :  { %1194 = vmatprep.subr.bf16.mxu1 %v1193_v54  ;;  %v1208_v17 = vpack.c.bf16 %v42_v16, %v41_v15  ;;  %v1211_v21 = vpack.c.bf16 %v44_v20, %v43_v19  ;;  %v862_v23 = vld [vmem:[%s1798_s2] ss:$0 sm:$0xff]  ;;  %p1250_p3 = por %p1249_p2, %p1248_p1 }
  0x3d   :  { %1164 = vmatpush3.bf16.msra.mxu0 %v1163_v60  ;;  %v40_v40 = vld [vmem:[%s1803_s7] sm:$0xff] }
  0x3e   :  { %1166 = vmatprep.subr.bf16.mxu0 %v1165_v62  ;;  %v863_v41 = vld [vmem:[%s1800_s4] ss:$0 sm:$0xff]  ;;  %p1251_p4 = pnand %p1250_p3, %p1244_p0 }
  0x3f   :  { %1196 = vmatpush3.bf16.msra.mxu1 %v1195_v61  ;;  %v865_v3 = vld [vmem:[%s1802_s6] ss:$0 sm:$0xff] }
  0x40   :  { %1198 = vmatprep.subr.bf16.mxu1 %v1197_v1  ;;  %v627_v1 = vlaneseq }
  0x41   :  { %1168 = vmatpush3.bf16.msra.mxu0 %v1167_v4 }
  0x42   :  { %1201 = vmatprep.subr.bf16.mxu0 %v1267_v10  ;;  %v628_v2 = vand.u32 127, %v627_v1  ;;  %v632_v13 = vshrl.u32 %v627_v1, 7 }
  0x43   :  { %1200 = vmatpush3.bf16.msra.mxu1 %v1199_v5 }
  0x44   :  { %386 = vmatmul.mubr.f32.vlgmr.msra.gmra.mrb[2].mxu0 %v36_v6  ;;  %1207 = vmatprep.subr.bf16.mxu1 %v1267_v10  ;;  %vm629_vm4 = vcmp.lt.s32.totalorder %v628_v2, 8  ;;  %vm633_vm5 = vcmp.lt.s32.totalorder %v632_v13, 4 }
  0x45   :  { %1203 = vmatpush3.bf16.msra.mxu0 %v1202_v11  ;;  %1037 = vmatprep.mubr.msk.f32.mxu0 %vm1268_vm0, %v1269_v18 }
  0x46   :  { %456 = vmatmul.mubr.f32.vlgmr.msra.gmra.mrb[2].mxu1 %v38_v7  ;;  %1204 = vmatprep.subr.bf16.mxu0 %v1267_v10 }
  0x47   :  { %1048 = vmatprep.mubr.msk.f32.mxu1 %vm1268_vm0, %v1269_v18  ;;  %1209 = vmatpush3.bf16.msra.mxu1 %v1208_v17 }
  0x48   :  { %1210 = vmatprep.subr.bf16.mxu1 %v1267_v10 }
  0x49   :  { %1206 = vmatpush3.bf16.msra.mxu0 %v1205_v14 }
  0x4a   :  { %1213 = vmatprep.subr.bf16.mxu0 %v1267_v10 }
  0x4b   :  { %1212 = vmatpush3.bf16.msra.mxu1 %v1211_v21 }
  0x4c   :  { %1219 = vmatprep.subr.bf16.mxu1 %v1267_v10 }
  0xf7   :  { %v901_v22 = vpop.f32.mrb[0].mxu0 }
  0xf8   :  { %v902_v24 = vpop.f32.mrb[1].mxu0 }
  0xf9   :  { %v936_v25 = vpop.f32.mrb[0].mxu1  ;;  %v903_v26 = vadd.f32 %v902_v24, %v901_v22 }
  0xfa   :  { %v937_v27 = vpop.f32.mrb[1].mxu1 }
  0xfb   :  { %v938_v28 = vadd.f32 %v937_v27, %v936_v25  ;;  %v248_v29 = vadd.f32 %v903_v26, %v862_v23  ;;  %v867_v25 = vsel %vm633_vm5, 1.0, %v1269_v18 }
  0xfd   :  { %v318_v30 = vadd.f32 %v938_v28, %v248_v29 }
 0x117   :  { %v971_v31 = vpop.f32.mrb[2].mxu0 }
 0x118   :  { %v972_v32 = vpop.f32.mrb[3].mxu0 }
 0x119   :  { %v1006_v33 = vpop.f32.mrb[2].mxu1  ;;  %v973_v34 = vadd.f32 %v972_v32, %v971_v31 }
 0x11a   :  { %v1007_v35 = vpop.f32.mrb[3].mxu1 }
 0x11b   :  { %v1008_v36 = vadd.f32 %v1007_v35, %v1006_v33  ;;  %v388_v37 = vadd.f32 %v973_v34, %v318_v30 }
 0x11d   :  { %v458_v38 = vadd.f32 %v1008_v36, %v388_v37 }
 0x11f   :  { %v461_v39 = vmax.f32 %v458_v38, 0.0 }
 0x121   :  { %1038 = vmatmul.mubr.msk.f32.vlgmr.msra.gmra.mrb[4].mxu0 %vm473_vm1, %v461_v39 }
 0x122   :  { %1215 = vmatpush3.bf16.xpose.msra.mxu0 %v1208_v17  ;;  %1059 = vmatprep.mubr.msk.f32.mxu0 %vm1268_vm0, %v1269_v18 }
 0x123   :  { %1216 = vmatprep.subr.bf16.mxu0 %v1267_v10 }
 0x12a   :  { %1218 = vmatpush3.bf16.xpose.msra.mxu0 %v1211_v21 }
 0x131   :  { %1060 = vmatmul.mubr.f32.vlgmr.msra.gmra.mrb[6].mxu0 %v40_v40 }
 0x1f4   :  { %v543_v42 = vpop.f32.mrb[4].mxu0 }
 0x1f5   :  { %v544_v43 = vadd.f32 %v863_v41, %v543_v42  ;;  %v1039_v44 = vpop.f32.mrb[5].mxu0 }
 0x1f7   :  { %v547_v45 = vmax.f32 %v544_v43, 0.0 }
 0x1f9   :  { %1049 = vmatmul.mubr.msk.f32.vlgmr.msra.gmra.mrb[4].mxu1 %vm473_vm1, %v547_v45  ;;  %v737_v51 = vmul.f32 %v547_v45, %v547_v45 }
 0x1fa   :  { %1221 = vmatpush3.bf16.msra.mxu1 %v1208_v17  ;;  %1070 = vmatprep.mubr.msk.f32.mxu1 %vm1268_vm0, %v1269_v18 }
 0x1fb   :  { %1222 = vmatprep.subr.bf16.mxu1 %v1267_v10  ;;  %v738_v52 = vsel %vm473_vm1, %v737_v51, 0.0 }
 0x1fe   :  { %1224 = vmatpush3.bf16.msra.mxu1 %v1211_v21 }
 0x204   :  { %v733_v46 = vpop.f32.mrb[6].mxu0 }
 0x205   :  { %v741_v47 = vmul.f32 %v733_v46, %v547_v45  ;;  %v1061_v48 = vpop.f32.mrb[7].mxu0 }
 0x207   :  { %v742_v49 = vmul.f32 %v741_v47, %v741_v47 }
 0x209   :  { %v743_v50 = vsel %vm473_vm1, %v742_v49, 0.0 }
 0x20a   :  { %744 = vadd.xlane.f32.xlu0 %v743_v50 }
 0x20e   :  { %739 = vadd.xlane.f32.xlu0 %v738_v52 }
 0x297   :  { %v745_v53 = vpop.xlane.xlu0 %744 }
 0x298   :  { %v746_v54 = vadd.f32 1e-12, %v745_v53 }
 0x29a   :  { %1231 = vrcp.f32 %v746_v54 }
 0x29b   :  { %v740_v56 = vpop.xlane.xlu0 %739 }
 0x2a4   :  { %v1232_v55 = vpop.eup %1231 }
 0x2a5   :  { %v748_v57 = vmul.f32 %v1232_v55, %v740_v56 }
 0x2a7   :  { %1233 = vrsqrt.f32 %v748_v57  ;;  %vm751_vm2 = vcmp.eq.f32.partialorder %v748_v57, inf  ;;  %v754_v60 = vand.u32 2147483648, %v748_v57  ;;  %vm753_vm3 = vcmp.eq.f32.partialorder %v748_v57, 0.0 }
 0x2b1   :  { %v1234_v58 = vpop.eup %1233 }
 0x2b2   :  { %v750_v59 = vmul.f32 %v1234_v58, %v748_v57 }
 0x2b4   :  { %v752_v61 = vsel %vm751_vm2, %v748_v57, %v750_v59 }
 0x2b5   :  { %v755_v62 = vsel %vm753_vm3, %v754_v60, %v752_v61 }
 0x2b6   :  { %v756_v63 = vmul.f32 %v755_v62, %v733_v46 }
 0x2b8   :  { %v757_v0 = vmul.f32 %v756_v63, %v547_v45 }
 0x2ba   :  { %1071 = vmatmul.mubr.msk.f32.vlgmr.msra.gmra.mrb[6].mxu1 %vm473_vm1, %v757_v0 }
 0x2cc   :  { %v623_v4 = vpop.f32.mrb[4].mxu1 }
 0x2cd   :  { %v624_v5 = vadd.f32 %v865_v3, %v623_v4  ;;  %v1050_v6 = vpop.f32.mrb[5].mxu1 }
 0x2cf   :  { %v630_v7 = vsel %vm629_vm4, %v624_v5, -1e+30 }
 0x2d0   :  { %636 = vmax.xlane.f32.xlu1 %v630_v7  ;;  %v646_v8 = vmul.f32 %v630_v7, %v40_v40 }
 0x2d2   :  { %647 = vadd.xlane.f32.xlu0 %v646_v8 }
 0x35d   :  { %v637_v9 = vpop.xlane.xlu1 %636 }
 0x35e   :  { %v638_v10 = vsub.f32 %v630_v7, %v637_v9 }
 0x35f   :  { %v648_v24 = vpop.xlane.xlu0 %647 }
 0x360   :  { %v639_v11 = vmul.f32 1.442695, %v638_v10 }
 0x362   :  { %1235 = vpow2.f32 %v639_v11 }
 0x36c   :  { %v1236_v12 = vpop.eup %1235 }
 0x36d   :  { %641 = vadd.xlane.f32.xlu1 %v1236_v12 }
 0x38d   :  { %v827_v14 = vpop.f32.mrb[6].mxu1 }
 0x38e   :  { %v828_v15 = vadd.f32 %v865_v3, %v827_v14  ;;  %v1072_v16 = vpop.f32.mrb[7].mxu1 }
 0x390   :  { %v831_v17 = vsel %vm629_vm4, %v828_v15, -1e+30 }
 0x391   :  { %v833_v19 = vsel %vm633_vm5, %v831_v17, %v630_v7 }
 0x392   :  { %834 = vmax.xlane.f32.xlu1 %v833_v19 }
 0x3fa   :  { %v642_v20 = vpop.xlane.xlu1 %641 }
 0x3fb   :  { %1237 = vlog2.f32 %v642_v20 }
 0x405   :  { %v1238_v21 = vpop.eup %1237 }
 0x406   :  { %v644_v22 = vmul.f32 0.6931472, %v1238_v21 }
 0x408   :  { %v645_v23 = vadd.f32 %v644_v22, %v637_v9 }
 0x40a   :  { %v649_v26 = vsub.f32 %v645_v23, %v648_v24 }
 0x40c   :  { %v650_v27 = vmul.f32 %v867_v25, %v649_v26 }
 0x40e   :  { %v652_v28 = vsel %vm651_vm6, %v650_v27, 0.0 }
 0x40f   :  { %653 = vadd.xlane.f32.xlu0 %v652_v28 }
 0x41f   :  { %v835_v29 = vpop.xlane.xlu1 %834 }
 0x420   :  { %v836_v30 = vsub.f32 %v833_v19, %v835_v29 }
 0x422   :  { %v837_v31 = vmul.f32 1.442695, %v836_v30 }
 0x424   :  { %1239 = vpow2.f32 %v837_v31 }
 0x42e   :  { %v1240_v32 = vpop.eup %1239 }
 0x42f   :  { %839 = vadd.xlane.f32.xlu1 %v1240_v32 }
 0x49c   :  { %v654_v33 = vpop.xlane.xlu0 %653 }
 0x49d   :  { %v655_v34 = vrot.slane %v654_v33, 4 }
 0x49f   :  { %v656_v35 = vadd.f32 %v655_v34, %v654_v33 }
 0x4a1   :  { %v657_v36 = vrot.slane %v656_v35, 2 }
 0x4a3   :  { %v658_v37 = vadd.f32 %v657_v36, %v656_v35 }
 0x4a5   :  { %v659_v38 = vrot.slane %v658_v37, 1 }
 0x4a7   :  { %v660_v39 = vadd.f32 %v659_v38, %v658_v37 }
 0x4a9   :  { %1225 = vpush %v660_v39 }
 0x4bc   :  { %v840_v18 = vpop.xlane.xlu1 %839 }
 0x4bd   :  { %1241 = vrcp.f32 %v840_v18 }
 0x4c7   :  { %v1242_v40 = vpop.eup %1241 }
 0x4c8   :  { %v842_v41 = vmul.f32 %v1242_v40, %v1240_v32 }
 0x4ca   :  { %843 = vst [vmem:[%s1804_s8] sm:$0xff] %v842_v41 }
 0x4da   :  { %s1226_s28 = spop %1225 }
 0x4db   :  { %v662_v42 = vstv %s1226_s28 }
 0x4dc   :  { %v664_v43 = vmul.f32 0.25, %v662_v42 }
 0x4de   :  { %666 = vst.msk [vmem:[#allocation2] sm:$0x1] %vm665_vm7, %v664_v43 }
 0x4df   :  { %1254 = shalt.err (!%p1251_p4)
}
 0x4e0   :  { %s1255_s8 = scalar_lea.hbm %s1805_s9, 16 }
 0x4e1   :  { %p1256_p5 = scmp.ne.s32.totalorder %s1805_s9, %s1255_s8  ;;  %p1259_p6 = scmp.lt.u32.totalorder %s1255_s8, %s1805_s9 }
 0x4e3   :  { %p1261_p7 = pnand %p1259_p6, %p1256_p5 }
 0x4e5   :  { %1264 = shalt.err (!%p1261_p7)
}
 0x4e6   :  { %855 = dma.vmem_to_hbm [thread:$0]  %s853_s27, 16, %s1805_s9, [#allocation3]  }
 0x4e7   :  { %1265 = dma.done.wait [#allocation3], 16  }
 0x4e8   :  { %1266 = vsyncadd [#allocation3], 4294967280 }
 0x4e9   :  { %861 = vsyncpa [#allocation3], 1 }

</bundles_post_ra>
